<compile_context>
chip_gen: v7x
topology: tpu7x:2x2x1
jax: 0.10.0
libtpu: 0.0.40
codegen_flags: <defaults>
</compile_context>

<pallas_src>
import jax
import jax.numpy as jnp
import numpy as np
import math

from jax.experimental import pallas as pl
from jax.experimental.pallas import tpu as pltpu


D = 512        # hidden width / per-style w feature dim
N_AGE = 50     # broadcast age columns in the original 612-wide concat
N_GEN = 50     # broadcast gender columns

# Rows of the packed per-mapper vector-parameter block (3, 8, 512) f32.
VP_B1, VP_CAGE, VP_CGEN, VP_B2, VP_B3, VP_A1, VP_A2, VP_PAD = range(8)


def _round_up(x, m):
    return (x + m - 1) // m * m


# ----------------------------------------------------------------------------
# Pallas kernel: one row-tile of one Mapper's 3-layer MLP.
# Grid is 1-D over row tiles; a scalar-prefetch table picks the weight set.
# ----------------------------------------------------------------------------
def mapper_kernel(mid_ref,        # SMEM (n_tiles,) i32 : tile -> mapper id (index_maps only)
                  x_ref,          # VMEM (TILE_R, 512) bf16 : w rows
                  ag_ref,         # VMEM (TILE_R, 2)   f32  : [age, gender] per row
                  vp_ref,         # VMEM (8, 512)      f32  : b1,csA,csG,b2,b3,a1,a2,pad
                  w1_ref,         # VMEM (512, 512)    bf16
                  w2_ref,         # VMEM (512, 512)    bf16
                  w3_ref,         # VMEM (512, 512)    bf16
                  o_ref):         # VMEM (TILE_R, 512) f32
    del mid_ref  # only consumed by the index_maps

    x = x_ref[...]
    ag = ag_ref[...]
    vp = vp_ref[...]

    b1 = vp[VP_B1:VP_B1 + 1, :]
    csa = vp[VP_CAGE:VP_CAGE + 1, :]
    csg = vp[VP_CGEN:VP_CGEN + 1, :]
    b2 = vp[VP_B2:VP_B2 + 1, :]
    b3 = vp[VP_B3:VP_B3 + 1, :]
    a1 = vp[VP_A1:VP_A1 + 1, :]
    a2 = vp[VP_A2:VP_A2 + 1, :]

    # Effective bias of layer 1: the 100 age/gender columns of the original
    # 612-wide concat are rank-1 per row, so they fold into the bias.
    age = ag[:, 0:1]
    gen = ag[:, 1:2]
    beff = b1 + age * csa + gen * csg                     # (TILE_R, 512) f32, VPU

    # Linear 1 (K = 512, bf16 MXU, f32 accumulation) + PReLU.
    h = jnp.dot(x, w1_ref[...], preferred_element_type=jnp.float32) + beff
    h = jnp.where(h > 0, h, a1 * h)

    # Linear 2 + PReLU.
    h = jnp.dot(h.astype(jnp.bfloat16), w2_ref[...],
                preferred_element_type=jnp.float32) + b2
    h = jnp.where(h > 0, h, a2 * h)

    # Linear 3.
    out = jnp.dot(h.astype(jnp.bfloat16), w3_ref[...],
                  preferred_element_type=jnp.float32) + b3
    o_ref[...] = out.astype(o_ref.dtype)


def _fused_mapper_call(x_flat, ag_flat, mapper_ids, params, tile_r):
    """x_flat: (R, 512) bf16, ag_flat: (R, 2) f32, mapper_ids: (n_tiles,) i32."""
    r_total, _ = x_flat.shape
    n_tiles = r_total // tile_r

    row_spec = pl.BlockSpec((tile_r, D), lambda t, mid: (t, 0))
    ag_spec = pl.BlockSpec((tile_r, 2), lambda t, mid: (t, 0))
    vp_spec = pl.BlockSpec((None, 8, D), lambda t, mid: (mid[t], 0, 0))
    w_spec = pl.BlockSpec((None, D, D), lambda t, mid: (mid[t], 0, 0))

    flops = 2 * r_total * D * (3 * D)
    bytes_accessed = (3 * 3 * D * D * 2          # bf16 weights (one pass each)
                      + 3 * 8 * D * 4            # packed vec params
                      + r_total * D * 2          # x bf16 in
                      + r_total * 2 * 4          # age/gender f32 in
                      + r_total * D * 4)         # f32 out

    return pl.pallas_call(
        mapper_kernel,
        out_shape=jax.ShapeDtypeStruct((r_total, D), jnp.float32),
        grid_spec=pltpu.PrefetchScalarGridSpec(
            num_scalar_prefetch=1,
            grid=(n_tiles,),
            in_specs=[row_spec, ag_spec, vp_spec, w_spec, w_spec, w_spec],
            out_specs=row_spec,
        ),
        compiler_params=pltpu.CompilerParams(
            dimension_semantics=("parallel",),      # balanced row split on v7x
            vmem_limit_bytes=32 * 1024 * 1024),
        cost_estimate=pl.CostEstimate(
            flops=flops, transcendentals=0, bytes_accessed=bytes_accessed),
    )(mapper_ids, x_flat, ag_flat,
      params["vparams"], params["w1"], params["w2"], params["w3"])


# ----------------------------------------------------------------------------
# Deterministic parameter init mirroring weights_init:
# xavier_normal_ weights, standard-normal biases, PReLU slopes at torch's
# default 0.25 (weights_init does not touch PReLU).
# ----------------------------------------------------------------------------
def init_linear(key, in_dim, out_dim):
    kw, kb = jax.random.split(key)
    std = math.sqrt(2.0 / (in_dim + out_dim))          # xavier_normal_, gain=1
    w = jax.random.normal(kw, (in_dim, out_dim), jnp.float32) * std   # (in, out)
    b = jax.random.normal(kb, (out_dim,), jnp.float32).reshape(1, out_dim)
    return w, b


def init_mapper(key, in_dim):
    assert in_dim == N_AGE + N_GEN, "condi uses 50 age + 50 gender columns"
    k1, k2, k3 = jax.random.split(key, 3)
    w1_full, b1 = init_linear(k1, in_dim + D, D)       # (612, 512)
    w2, b2 = init_linear(k2, D, D)
    w3, b3 = init_linear(k3, D, D)
    # Rank-1 fold of layer 1: the 50 age / 50 gender columns are identical per
    # row, so  xx @ W1_full == w @ W1[:512] + age*colsum_age + gender*colsum_gen.
    w1_main = w1_full[:D]
    csum_age = jnp.sum(w1_full[D:D + N_AGE], axis=0, keepdims=True)                  # (1, 512)
    csum_gen = jnp.sum(w1_full[D + N_AGE:D + N_AGE + N_GEN], axis=0, keepdims=True)  # (1, 512)
    alpha = jnp.full((1, D), 0.25, jnp.float32)        # scalar PReLU, lane-broadcast
    vp = jnp.concatenate(
        [b1, csum_age, csum_gen, b2, b3, alpha, alpha,
         jnp.zeros((1, D), jnp.float32)], axis=0)      # (8, 512) f32
    return dict(w1=w1_main, w2=w2, w3=w3, vp=vp)


def init_condi(key, in_dim=100):
    keys = jax.random.split(key, 3)
    ms = [init_mapper(k, in_dim) for k in keys]
    return {
        # Weights streamed as bf16 (cast once here); vec params stay f32.
        "w1": jnp.stack([m["w1"] for m in ms]).astype(jnp.bfloat16),  # (3, 512, 512)
        "w2": jnp.stack([m["w2"] for m in ms]).astype(jnp.bfloat16),
        "w3": jnp.stack([m["w3"] for m in ms]).astype(jnp.bfloat16),
        "vparams": jnp.stack([m["vp"] for m in ms]),                   # (3, 8, 512) f32
    }


# ----------------------------------------------------------------------------
# condi.forward
# ----------------------------------------------------------------------------
def condi_forward(params, w, age, gender):
    """
    w:      (B, 18, 512) float32
    age:    (B, 1)       float32
    gender: (B, 1)       float32
    returns (B, 18, 512) float32
    """
    B = w.shape[0]
    segs = ((w[:, :4, :], 4), (w[:, 4:8, :], 4), (w[:, 8:, :], 10))
    r_m = [B * n for _, n in segs]

    # Row tile: multiple of 16 (bf16 sublane packing), capped at 512; sized
    # from the smallest segment so small batches don't over-pad.
    tile_r = min(512, _round_up(max(min(r_m), 16), 16))
    rp = [_round_up(r, tile_r) for r in r_m]
    n_tiles_m = [p // tile_r for p in rp]

    xs, ags = [], []
    for m, (slab, n) in enumerate(segs):
        r = r_m[m]
        pad = rp[m] - r
        x2d = slab.reshape(r, D).astype(jnp.bfloat16)
        ag2d = jnp.concatenate(
            [jnp.repeat(age, n, axis=0), jnp.repeat(gender, n, axis=0)], axis=1)
        xs.append(jnp.pad(x2d, ((0, pad), (0, 0))))
        ags.append(jnp.pad(ag2d, ((0, pad), (0, 0))))

    x_flat = jnp.concatenate(xs, axis=0)       # (R, 512) bf16, ragged segments
    ag_flat = jnp.concatenate(ags, axis=0)     # (R, 2)   f32

    # Static tile -> mapper-id table (scalar-prefetched into SMEM).
    mapper_ids = jnp.asarray(
        np.concatenate([np.full(nt, m, dtype=np.int32)
                        for m, nt in enumerate(n_tiles_m)]))

    y = _fused_mapper_call(x_flat, ag_flat, mapper_ids, params, tile_r)  # (R, 512) f32

    off1 = rp[0]
    off2 = rp[0] + rp[1]
    y_coarse = y[0:r_m[0]].reshape(B, 4, D)
    y_medium = y[off1:off1 + r_m[1]].reshape(B, 4, D)
    y_fine = y[off2:off2 + r_m[2]].reshape(B, 10, D)
    return jnp.concatenate([y_coarse, y_medium, y_fine], axis=1)


# ----------------------------------------------------------------------------
# Pure-JAX reference (same bf16 weights / same math, no Pallas) for a sanity check.
# ----------------------------------------------------------------------------
def condi_reference(params, w, age, gender):
    B = w.shape[0]
    segs = ((w[:, :4, :], 4), (w[:, 4:8, :], 4), (w[:, 8:, :], 10))
    outs = []
    for m, (slab, n) in enumerate(segs):
        x = slab.reshape(B * n, D).astype(jnp.bfloat16)
        vp = params["vparams"][m]
        b1, csa, csg = vp[VP_B1:VP_B1 + 1], vp[VP_CAGE:VP_CAGE + 1], vp[VP_CGEN:VP_CGEN + 1]
        b2, b3 = vp[VP_B2:VP_B2 + 1], vp[VP_B3:VP_B3 + 1]
        a1, a2 = vp[VP_A1:VP_A1 + 1], vp[VP_A2:VP_A2 + 1]
        ar = jnp.repeat(age, n, axis=0)
        gr = jnp.repeat(gender, n, axis=0)
        h = jnp.dot(x, params["w1"][m], preferred_element_type=jnp.float32)
        h = h + b1 + ar * csa + gr * csg
        h = jnp.where(h > 0, h, a1 * h)
        h = jnp.dot(h.astype(jnp.bfloat16), params["w2"][m],
                    preferred_element_type=jnp.float32) + b2
        h = jnp.where(h > 0, h, a2 * h)
        o = jnp.dot(h.astype(jnp.bfloat16), params["w3"][m],
                    preferred_element_type=jnp.float32) + b3
        outs.append(o.reshape(B, n, D))
    return jnp.concatenate(outs, axis=1)


# ----------------------------------------------------------------------------
if __name__ == "__main__":
    key = jax.random.PRNGKey(0)
    kp, kw, ka, kg = jax.random.split(key, 4)

    B = 2
    params = init_condi(kp, in_dim=100)

    w = jax.random.normal(kw, (B, 18, D), jnp.float32)
    age = jax.random.normal(ka, (B, 1), jnp.float32)
    gender = jax.random.normal(kg, (B, 1), jnp.float32)

    out = jax.jit(condi_forward)(params, w, age, gender)
    out = jax.block_until_ready(out)

    assert out.shape == (B, 18, D), out.shape
    assert out.dtype == jnp.float32
    assert bool(jnp.all(jnp.isfinite(out)))

    ref = jax.block_until_ready(condi_reference(params, w, age, gender))
    max_err = float(jnp.max(jnp.abs(out - ref)))
    assert max_err < 0.1, f"mismatch vs reference: {max_err}"

    print("KERNEL_OK")
</pallas_src>

<mosaic_0001>
module attributes {stable_mosaic.version = 11 : i64} {
  func.func @mapper_kernel(%arg0: i32, %arg1: memref<4xi32, #tpu.memory_space<smem>>, %arg2: memref<16x512xbf16, #tpu.memory_space<vmem>>, %arg3: memref<16x2xf32, #tpu.memory_space<vmem>>, %arg4: memref<1x8x512xf32, #tpu.memory_space<vmem>>, %arg5: memref<1x512x512xbf16, #tpu.memory_space<vmem>>, %arg6: memref<1x512x512xbf16, #tpu.memory_space<vmem>>, %arg7: memref<1x512x512xbf16, #tpu.memory_space<vmem>>, %arg8: memref<16x512xf32, #tpu.memory_space<vmem>>) attributes {dimension_semantics = [#tpu.dimension_semantics<parallel>], iteration_bounds = array<i64: 4>, scalar_prefetch = 1 : i64, scratch_operands = 0 : i64, tpu.core_type = #tpu.core_type<tc>, window_params = [{transform_indices = @transform_0, window_bounds = array<i64: 16, 512>}, {transform_indices = @transform_1, window_bounds = array<i64: 16, 2>}, {transform_indices = @transform_2, window_bounds = array<i64: 1, 8, 512>}, {transform_indices = @transform_3, window_bounds = array<i64: 1, 512, 512>}, {transform_indices = @transform_4, window_bounds = array<i64: 1, 512, 512>}, {transform_indices = @transform_5, window_bounds = array<i64: 1, 512, 512>}, {transform_indices = @transform_6, window_bounds = array<i64: 16, 512>}]} {
    %c0 = arith.constant 0 : index
    %c0_0 = arith.constant 0 : index
    %0 = vector.load %arg2[%c0, %c0_0] : memref<16x512xbf16, #tpu.memory_space<vmem>>, vector<16x512xbf16>
    %c0_1 = arith.constant 0 : index
    %c0_2 = arith.constant 0 : index
    %1 = vector.load %arg3[%c0_1, %c0_2] : memref<16x2xf32, #tpu.memory_space<vmem>>, vector<16x2xf32>
    %c0_3 = arith.constant 0 : index
    %c0_4 = arith.constant 0 : index
    %c0_5 = arith.constant 0 : index
    %2 = vector.load %arg4[%c0_3, %c0_4, %c0_5] : memref<1x8x512xf32, #tpu.memory_space<vmem>>, vector<1x8x512xf32>
    %3 = vector.shape_cast %2 : vector<1x8x512xf32> to vector<8x512xf32>
    %4 = vector.extract_strided_slice %3 {offsets = [0, 0], sizes = [1, 512], strides = [1, 1]} : vector<8x512xf32> to vector<1x512xf32>
    %5 = vector.extract_strided_slice %3 {offsets = [1, 0], sizes = [1, 512], strides = [1, 1]} : vector<8x512xf32> to vector<1x512xf32>
    %6 = vector.extract_strided_slice %3 {offsets = [2, 0], sizes = [1, 512], strides = [1, 1]} : vector<8x512xf32> to vector<1x512xf32>
    %7 = vector.extract_strided_slice %3 {offsets = [3, 0], sizes = [1, 512], strides = [1, 1]} : vector<8x512xf32> to vector<1x512xf32>
    %8 = vector.extract_strided_slice %3 {offsets = [4, 0], sizes = [1, 512], strides = [1, 1]} : vector<8x512xf32> to vector<1x512xf32>
    %9 = vector.extract_strided_slice %3 {offsets = [5, 0], sizes = [1, 512], strides = [1, 1]} : vector<8x512xf32> to vector<1x512xf32>
    %10 = vector.extract_strided_slice %3 {offsets = [6, 0], sizes = [1, 512], strides = [1, 1]} : vector<8x512xf32> to vector<1x512xf32>
    %11 = vector.extract_strided_slice %1 {offsets = [0, 0], sizes = [16, 1], strides = [1, 1]} : vector<16x2xf32> to vector<16x1xf32>
    %12 = vector.extract_strided_slice %1 {offsets = [0, 1], sizes = [16, 1], strides = [1, 1]} : vector<16x2xf32> to vector<16x1xf32>
    %13 = vector.broadcast %11 : vector<16x1xf32> to vector<16x512xf32>
    %14 = vector.broadcast %5 : vector<1x512xf32> to vector<16x512xf32>
    %15 = arith.mulf %13, %14 : vector<16x512xf32>
    %16 = vector.broadcast %4 : vector<1x512xf32> to vector<16x512xf32>
    %17 = arith.addf %16, %15 : vector<16x512xf32>
    %18 = vector.broadcast %12 : vector<16x1xf32> to vector<16x512xf32>
    %19 = vector.broadcast %6 : vector<1x512xf32> to vector<16x512xf32>
    %20 = arith.mulf %18, %19 : vector<16x512xf32>
    %21 = arith.addf %17, %20 : vector<16x512xf32>
    %c0_6 = arith.constant 0 : index
    %c0_7 = arith.constant 0 : index
    %c0_8 = arith.constant 0 : index
    %22 = vector.load %arg5[%c0_6, %c0_7, %c0_8] : memref<1x512x512xbf16, #tpu.memory_space<vmem>>, vector<1x512x512xbf16>
    %23 = vector.shape_cast %22 : vector<1x512x512xbf16> to vector<512x512xbf16>
    %cst = arith.constant dense<0.000000e+00> : vector<16x512xf32>
    %24 = tpu.matmul %0, %23, %cst {dimension_numbers = #tpu.dot_dimension_numbers<[1], [0], [0], [1], [0, 0, 1, 1], [], []>} : vector<16x512xbf16>, vector<512x512xbf16>, vector<16x512xf32> -> vector<16x512xf32>
    %25 = arith.addf %24, %21 : vector<16x512xf32>
    %cst_9 = arith.constant 0.000000e+00 : f32
    %26 = vector.broadcast %cst_9 : f32 to vector<16x512xf32>
    %27 = arith.cmpf ogt, %25, %26 : vector<16x512xf32>
    %28 = vector.broadcast %9 : vector<1x512xf32> to vector<16x512xf32>
    %29 = arith.mulf %28, %25 : vector<16x512xf32>
    %30 = arith.select %27, %25, %29 : vector<16x512xi1>, vector<16x512xf32>
    %31 = arith.truncf %30 : vector<16x512xf32> to vector<16x512xbf16>
    %c0_10 = arith.constant 0 : index
    %c0_11 = arith.constant 0 : index
    %c0_12 = arith.constant 0 : index
    %32 = vector.load %arg6[%c0_10, %c0_11, %c0_12] : memref<1x512x512xbf16, #tpu.memory_space<vmem>>, vector<1x512x512xbf16>
    %33 = vector.shape_cast %32 : vector<1x512x512xbf16> to vector<512x512xbf16>
    %cst_13 = arith.constant dense<0.000000e+00> : vector<16x512xf32>
    %34 = tpu.matmul %31, %33, %cst_13 {dimension_numbers = #tpu.dot_dimension_numbers<[1], [0], [0], [1], [0, 0, 1, 1], [], []>} : vector<16x512xbf16>, vector<512x512xbf16>, vector<16x512xf32> -> vector<16x512xf32>
    %35 = vector.broadcast %7 : vector<1x512xf32> to vector<16x512xf32>
    %36 = arith.addf %34, %35 : vector<16x512xf32>
    %cst_14 = arith.constant 0.000000e+00 : f32
    %37 = vector.broadcast %cst_14 : f32 to vector<16x512xf32>
    %38 = arith.cmpf ogt, %36, %37 : vector<16x512xf32>
    %39 = vector.broadcast %10 : vector<1x512xf32> to vector<16x512xf32>
    %40 = arith.mulf %39, %36 : vector<16x512xf32>
    %41 = arith.select %38, %36, %40 : vector<16x512xi1>, vector<16x512xf32>
    %42 = arith.truncf %41 : vector<16x512xf32> to vector<16x512xbf16>
    %c0_15 = arith.constant 0 : index
    %c0_16 = arith.constant 0 : index
    %c0_17 = arith.constant 0 : index
    %43 = vector.load %arg7[%c0_15, %c0_16, %c0_17] : memref<1x512x512xbf16, #tpu.memory_space<vmem>>, vector<1x512x512xbf16>
    %44 = vector.shape_cast %43 : vector<1x512x512xbf16> to vector<512x512xbf16>
    %cst_18 = arith.constant dense<0.000000e+00> : vector<16x512xf32>
    %45 = tpu.matmul %42, %44, %cst_18 {dimension_numbers = #tpu.dot_dimension_numbers<[1], [0], [0], [1], [0, 0, 1, 1], [], []>} : vector<16x512xbf16>, vector<512x512xbf16>, vector<16x512xf32> -> vector<16x512xf32>
    %46 = vector.broadcast %8 : vector<1x512xf32> to vector<16x512xf32>
    %47 = arith.addf %45, %46 : vector<16x512xf32>
    %c0_19 = arith.constant 0 : index
    %c0_20 = arith.constant 0 : index
    %48 = vector.load %arg8[%c0_19, %c0_20] : memref<16x512xf32, #tpu.memory_space<vmem>>, vector<16x512xf32>
    tpu.vector_store %arg8[%c0_19, %c0_20], %47 {strides = array<i32>} : memref<16x512xf32, #tpu.memory_space<vmem>>, vector<16x512xf32>,
    return
  }
  func.func @transform_0(%arg0: i32, %arg1: memref<4xi32, #tpu.memory_space<smem>>) -> (i32, i32) {
    %c0_i32 = arith.constant 0 : i32
    %c0_i32_0 = arith.constant 0 : i32
    return %arg0, %c0_i32 : i32, i32
  }
  func.func @transform_1(%arg0: i32, %arg1: memref<4xi32, #tpu.memory_space<smem>>) -> (i32, i32) {
    %c0_i32 = arith.constant 0 : i32
    %c0_i32_0 = arith.constant 0 : i32
    return %arg0, %c0_i32 : i32, i32
  }
  func.func @transform_2(%arg0: i32, %arg1: memref<4xi32, #tpu.memory_space<smem>>) -> (i32, i32, i32) {
    %0 = arith.index_cast %arg0 : i32 to index
    %1 = memref.load %arg1[%0] : memref<4xi32, #tpu.memory_space<smem>>
    %c0_i32 = arith.constant 0 : i32
    %c0_i32_0 = arith.constant 0 : i32
    %c0_i32_1 = arith.constant 0 : i32
    return %1, %c0_i32, %c0_i32_0 : i32, i32, i32
  }
  func.func @transform_3(%arg0: i32, %arg1: memref<4xi32, #tpu.memory_space<smem>>) -> (i32, i32, i32) {
    %0 = arith.index_cast %arg0 : i32 to index
    %1 = memref.load %arg1[%0] : memref<4xi32, #tpu.memory_space<smem>>
    %c0_i32 = arith.constant 0 : i32
    %c0_i32_0 = arith.constant 0 : i32
    %c0_i32_1 = arith.constant 0 : i32
    return %1, %c0_i32, %c0_i32_0 : i32, i32, i32
  }
  func.func @transform_4(%arg0: i32, %arg1: memref<4xi32, #tpu.memory_space<smem>>) -> (i32, i32, i32) {
    %0 = arith.index_cast %arg0 : i32 to index
    %1 = memref.load %arg1[%0] : memref<4xi32, #tpu.memory_space<smem>>
    %c0_i32 = arith.constant 0 : i32
    %c0_i32_0 = arith.constant 0 : i32
    %c0_i32_1 = arith.constant 0 : i32
    return %1, %c0_i32, %c0_i32_0 : i32, i32, i32
  }
  func.func @transform_5(%arg0: i32, %arg1: memref<4xi32, #tpu.memory_space<smem>>) -> (i32, i32, i32) {
    %0 = arith.index_cast %arg0 : i32 to index
    %1 = memref.load %arg1[%0] : memref<4xi32, #tpu.memory_space<smem>>
    %c0_i32 = arith.constant 0 : i32
    %c0_i32_0 = arith.constant 0 : i32
    %c0_i32_1 = arith.constant 0 : i32
    return %1, %c0_i32, %c0_i32_0 : i32, i32, i32
  }
  func.func @transform_6(%arg0: i32, %arg1: memref<4xi32, #tpu.memory_space<smem>>) -> (i32, i32) {
    %c0_i32 = arith.constant 0 : i32
    %c0_i32_0 = arith.constant 0 : i32
    return %arg0, %c0_i32 : i32, i32
  }
}

</mosaic_0001>

<bundles_post_ra>
// kernel: condi_forward.1
= control target key start
LH: loop header
LB: loop body
LE: loop exit
PB: predicated region body
PF: predicated region fallthrough
CT: control target
= control target key end

     0   :  { %s6151_s0 = inlined_call_operand.hbm [shape: s32[4], index: 0, kind: input, shape index: {}]   ;;  %s6152_s1 = inlined_call_operand.vmem [shape: bf16[64,512], index: 1, kind: input, shape index: {}]   ;;  %s6153_s2 = inlined_call_operand.vmem [shape: f32[64,2], index: 2, kind: input, shape index: {}]   ;;  %s6154_s3 = inlined_call_operand.hbm [shape: f32[3,8,512], index: 3, kind: input, shape index: {}]   ;;  %s6155_s4 = inlined_call_operand.hbm [shape: bf16[3,512,512], index: 4, kind: input, shape index: {}]   ;;  %s6156_s5 = inlined_call_operand.hbm [shape: bf16[3,512,512], index: 5, kind: input, shape index: {}]   ;;  %s6157_s6 = inlined_call_operand.hbm [shape: bf16[3,512,512], index: 6, kind: input, shape index: {}]   ;;  %s6158_s7 = inlined_call_operand.vmem [shape: f32[64,512], index: 7, kind: output, shape index: {}]  }
   0x1   :  { %6174 = sst [smem:[#allocation30_spill]] %s6152_s1  ;;  %s4902_s26 = scalar_lea.hbm %s6151_s0, 16 }
   0x2   :  { %6175 = sst [smem:[#allocation31_spill]] %s6153_s2  ;;  %p4903_p0 = scmp.ne.s32.totalorder %s6151_s0, %s4902_s26 }
   0x3   :  { %6176 = sst [smem:[#allocation32_spill]] %s6154_s3  ;;  %p4906_p1 = scmp.lt.u32.totalorder %s4902_s26, %s6151_s0 }
   0x4   :  { %6177 = sst [smem:[#allocation33_spill]] %s6155_s4 }
   0x5   :  { %6178 = sst [smem:[#allocation34_spill]] %s6156_s5  ;;  %p4908_p2 = pnand %p4906_p1, %p4903_p0 }
   0x6   :  { %6179 = sst [smem:[#allocation35_spill]] %s6158_s7 }
   0x7   :  { %4911 = shalt.err (!%p4908_p2)  }
   0x8   :  { %s5154_s8 = smov [#allocation3]  }
   0x9   :  { %13 = dma.hbm_to_smem %s6151_s0, 16, %s5154_s8, [#allocation2] }
   0xa   :  { %5084 = dma.done.wait [#allocation2], 16 }
   0xb   :  { %5085 = vsyncadd [#allocation2], 4294967280 }
   0xc   :  { %15 = sfence }
   0xd   :  { %16 = vsyncpa [#allocation5], 0 }
   0xe   :  { %18 = vsyncpa [#allocation5 + $0x1], 0 }
   0xf   :  { %19 = vsyncpa [#allocation7], 0 }
  0x10   :  { %21 = vsyncpa [#allocation7 + $0x1], 0 }
  0x11   :  { %22 = vsyncpa [#allocation10], 0 }
  0x12   :  { %24 = vsyncpa [#allocation10 + $0x1], 0  ;;  %s5215_s11 = smov 0   ;;  %s5217_s12 = smov 0  }
  0x13   :  { %s5219_s13 = smov 0   ;;  %s5221_s14 = smov 0  }
  0x14   :  { %s5223_s15 = smov 0   ;;  %s5225_s0 = smov 0  }
  0x15   :  { %s5227_s16 = smov 0   ;;  %s5229_s17 = smov 0  }
  0x16   :  { %s5231_s18 = smov 0   ;;  %s5233_s19 = smov 0  }
  0x17   :  { %s5235_s20 = smov 0   ;;  %s5237_s21 = smov 0  }
  0x18   :  { %s5239_s22 = smov 0  }
  0x19 LB: > { %6180 = sst [smem:[#allocation24_spill]] %s5132_s17  ;;  %s5279_s23 = sadd.s32 4294967295, %s5152_s22   ;;  %s5152_s22 = sphi %s5239_s22, %s6244_s22   ;;  %s5148_s21 = sphi %s5237_s21, %s6234_s21   ;;  %s5144_s20 = sphi %s5235_s20, %s6243_s20   ;;  %s5140_s19 = sphi %s5233_s19, %s6242_s19   ;;  %s5136_s18 = sphi %s5231_s18, %s6241_s18   ;;  %s5132_s17 = sphi %s5229_s17, %s6231_s17   ;;  %s5128_s16 = sphi %s5227_s16, %s6230_s16   ;;  %s5124_s0 = sphi %s5225_s0, %s6240_s0   ;;  %s5120_s15 = sphi %s5223_s15, %s6239_s15   ;;  %s5116_s14 = sphi %s5221_s14, %s6238_s14   ;;  %s5112_s13 = sphi %s5219_s13, %s6237_s13   ;;  %s5108_s12 = sphi %s5217_s12, %s6236_s12   ;;  %s5104_s11 = sphi %s5215_s11, %s6235_s11  }
  0x1a   : > { %6181 = sst [smem:[#allocation25_spill]] %s5136_s18  ;;  %s5282_s24 = sadd.s32 1, %s5152_s22  }
  0x1b   : > { %6182 = sst [smem:[#allocation26_spill]] %s5148_s21  ;;  %p6164_p3 = scmp.eq.s32.totalorder %s5152_s22, 0 }
  0x1c   : > { %p6163_p4 = scmp.eq.s32.totalorder %s5279_s23, 0  ;;  %s114_s25 = sld [smem:[#allocation3 + %s5152_s22]] }
  0x1d   : > { %s115_s26 = sld [smem:[#allocation3 + %s5282_s24]]  ;;  %s119_s27 = sadd.s32 1, %s5136_s18 }
  0x1e   : > { %p126_p5 = scmp.ne.s32.totalorder %s5136_s18, %s5132_s17  ;;  %p132_p6 = scmp.ne.s32.totalorder %s5132_s17, %s5128_s16 }
  0x1f   : > { %p6162_p8 = scmp.lt.s32.totalorder %s5152_s22, 4  ;;  %s277_s30 = sand.u32 1, %s5152_s22  }
  0x20   : > { %p5294_p7 = por %p126_p5, %p6164_p3  ;;  %p5301_p9 = por %p132_p6, %p6163_p4 }
  0x21   : > { %s279_s8 = sand.u32 1, %s5136_s18   ;;  %p3709_p12 = scmp.ge.s32.totalorder %s5152_s22, 1 }
  0x22   : > { %s6184_s29 = scalar_select %p5301_p9, 1, 0 }
  0x23   : > { %s116_s9 = ssub.s32 %s114_s25, %s115_s26  ;;  %s3700_s10 = sshll.u32 %s279_s8, 10 }
  0x24   : > { %6185 = sst [smem:[#allocation27_spill]] %s6184_s29  ;;  %p117_p10 = scmp.eq.s32.totalorder %s116_s9, 0 }
  0x25   : > { %s4169_s16 = scalar_select %p5294_p7, [#allocation3], [#allocation12] }
  0x26   : > { %s5310_s7 = scalar_select %p117_p10, %s5136_s18, %s119_s27  }
  0x27   : > { %s4170_s2 = scalar_select %p5294_p7, %s5152_s22, 0 }
  0x28   : > { %6186 = sst [smem:[#allocation28_spill]] %s5310_s7  ;;  %s6246_s16 = smov (!%p6162_p8, %s4169_s16), [#allocation16] }
  0x29   : > { %s6248_s2 = smov (!%p6162_p8, %s4170_s2), 0  ;;  %s281_s1 = scalar_lea.vmem [#allocation6], %s3700_s10 }
  0x2a   : > { %s289_s17 = sshll.u32 %s281_s1, 4  ;;  %p5323_p11 = pnand %p6162_p8, %p5294_p7  ;;  %s5327_s17 = int_to_ptr.vmem [resolvable:$true] %s289_s17 }
  0x2b   : > { %s282_s25 = sld [smem:[%s6246_s16 + %s6248_s2]]  ;;  %p341_p13 = scmp.lt.s32.totalorder %s5152_s22, 5 }
  0x2c   : > { %s6189_s4 = sld [smem:[#allocation33_spill]]  ;;  %s5340_s9 = scalar_lea.sflag [#allocation7], %s277_s30 }
  0x2d   : > { %p5331_p0 = pnand %p3709_p12, %p341_p13  ;;  %p4914_p2 = pneg %p5323_p11 }
  0x2f   : > { %s6188_s26 = scalar_select %p5331_p0, 1, 0 }
  0x31   : > { %s4113_s27 = sshll.u32 %s282_s25, 14 }
  0x32   : > { %s5338_s28 = scalar_lea.hbm %s6189_s4, %s4113_s27  ;;  %s4917_s25 = scalar_lea.hbm %s6189_s4, 49152 }
  0x33   : > { %s4912_s2 = scalar_lea.hbm %s5338_s28, 16384  ;;  %p4918_p7 = scmp.lt.u32.totalorder %s5338_s28, %s6189_s4 }
  0x34   : > { %p4913_p1 = scmp.ne.s32.totalorder %s5338_s28, %s4912_s2  ;;  %p4919_p10 = scmp.lt.u32.totalorder %s4917_s25, %s4912_s2 }
  0x35   : > { %p4921_p13 = scmp.lt.u32.totalorder %s4912_s2, %s5338_s28 }
  0x36   : > { %p4915_p5 = pnand %p4914_p2, %p4913_p1  ;;  %p4920_p12 = por %p4919_p10, %p4918_p7 }
  0x38   : > { %p4916_p6 = pneg %p4915_p5  ;;  %p4922_p8 = por %p4921_p13, %p4920_p12 }
  0x3a   : > { %p4923_p4 = pnand %p4922_p8, %p4916_p6 }
  0x3c   : > { %4926 = shalt.err (!%p4923_p4)
}
  0x3d   : > { %s4927_s30 = scalar_lea.vmem %s5327_s17, 16384  ;;  %s5155_s1 = smov [#allocation6]  }
  0x3e   : > { %p4928_p1 = scmp.ne.s32.totalorder %s5327_s17, %s4927_s30  ;;  %s4932_s10 = sshll.u32 %s5155_s1, 4  ;;  %s4933_s10 = int_to_ptr.vmem [resolvable:$false] %s4932_s10 }
  0x3f   : > { %s4934_s16 = scalar_lea.vmem %s4933_s10, 32768  ;;  %p4935_p9 = scmp.lt.s32.totalorder %s5327_s17, %s4933_s10 }
  0x40   : > { %p4930_p5 = pnand %p4928_p1, %p4914_p2  ;;  %p4936_p7 = scmp.lt.s32.totalorder %s4934_s16, %s4927_s30 }
  0x42   : > { %p4931_p3 = pneg %p4930_p5  ;;  %p4937_p10 = por %p4936_p7, %p4935_p9 }
  0x44   : > { %p4938_p12 = pnand %p4937_p10, %p4931_p3 }
  0x46   : > { %4941 = shalt.err (!%p4938_p12)
}
  0x47   : > { %s6166_s2 = smov 256   ;;  %s6168_s25 = smov 16  }
  0x48   : > { %4192 = dma.hbm_to_vmem [thread:$0]  (!%p5323_p11), %s5338_s28, 16384, %s5327_s17, %s5340_s9, %s6166_s2, %s6166_s2, %s6168_s25  }
  0x49   : > { %s86_s27 = sld [smem:[#allocation3 + %s5152_s22]]  ;;  %s91_s30 = sadd.s32 1, %s5148_s21 }
  0x4a   : > { %s87_s8 = sld [smem:[#allocation3 + %s5282_s24]]  ;;  %p98_p3 = scmp.ne.s32.totalorder %s5148_s21, %s5144_s20 }
  0x4b   : > { %p104_p4 = scmp.ne.s32.totalorder %s5144_s20, %s5140_s19  ;;  %s257_s1 = sand.u32 1, %s5148_s21  }
  0x4c   : > { %p6190_p8 = scmp.eq.s32.totalorder %s5152_s22, 0  ;;  %p6192_p2 = scmp.eq.s32.totalorder %s5279_s23, 0 }
  0x4d   : > { %s3697_s29 = sshll.u32 %s257_s1, 5  ;;  %p6194_p6 = scmp.lt.s32.totalorder %s5152_s22, 4 }
  0x4e   : > { %p5381_p9 = por %p6190_p8, %p98_p3  ;;  %p5387_p11 = por %p6192_p2, %p104_p4 }
  0x4f   : > { %s261_s16 = scalar_lea.vmem [#allocation4], %s3697_s29  ;;  %p6197_p5 = pmov %p6194_p6 }
  0x50   : > { %s6193_s17 = scalar_select %p5387_p11, 1, 0 }
  0x51   : > { %p5395_p13 = pnand %p6194_p6, %p5381_p9  ;;  %s88_s28 = ssub.s32 %s86_s27, %s87_s8 }
  0x52   : > { %s270_s2 = sshll.u32 %s261_s16, 4  ;;  %p89_p1 = scmp.eq.s32.totalorder %s88_s28, 0  ;;  %s5399_s2 = int_to_ptr.vmem [resolvable:$true] %s270_s2 }
  0x53   : > { %s4166_s25 = scalar_select %p5381_p9, [#allocation3], [#allocation11] }
  0x54   : > { %s5404_s4 = scalar_select %p89_p1, %s5148_s21, %s91_s30  }
  0x55   : > { %s4167_s7 = scalar_select %p5381_p9, %s5152_s22, 0 }
  0x56   : > { %6196 = sst [smem:[#allocation29_spill]] %s5404_s4  ;;  %s6250_s25 = smov (!%p6197_p5, %s4166_s25), [#allocation15] }
  0x57   : > { %p6198_p7 = pmov %p6197_p5  ;;  %s5414_s8 = sld [smem:[#allocation3 + %s5152_s22]] }
  0x58   : > { %s5417_s29 = sld [smem:[#allocation3 + %s5282_s24]]  ;;  %p154_p10 = scmp.ne.s32.totalorder %s5124_s0, %s5120_s15 }
  0x59   : > { %s6252_s7 = smov (!%p6198_p7, %s4167_s7), 0  ;;  %p160_p12 = scmp.ne.s32.totalorder %s5120_s15, %s5116_s14 }
  0x5a   : > { %s262_s27 = sld [smem:[%s6250_s25 + %s6252_s7]]  ;;  %s301_s16 = sand.u32 1, %s5124_s0  }
  0x5b   : > { %p6199_p3 = pmov %p6190_p8  ;;  %s6201_s3 = sld [smem:[#allocation32_spill]] }
  0x5c   : > { %p6202_p8 = pmov %p6192_p2  ;;  %s258_s14 = scalar_lea.sflag [#allocation5], %s257_s1 }
  0x5d   : > { %p5427_p4 = por %p154_p10, %p6199_p3  ;;  %p4944_p6 = pneg %p5395_p13 }
  0x5e   : > { %p5438_p9 = por %p160_p12, %p6202_p8 }
  0x60   : > { %s4112_s18 = sshll.u32 %s262_s27, 9 }
  0x61   : > { %s5434_s21 = scalar_lea.hbm %s6201_s3, %s4112_s18  ;;  %s4947_s27 = scalar_lea.hbm %s6201_s3, 1536 }
  0x62   : > { %s6203_s7 = scalar_select %p5438_p9, 1, 0 }
  0x63   : > { %s4942_s25 = scalar_lea.hbm %s5434_s21, 512  ;;  %p4948_p7 = scmp.lt.u32.totalorder %s5434_s21, %s6201_s3 }
  0x64   : > { %p4943_p2 = scmp.ne.s32.totalorder %s5434_s21, %s4942_s25  ;;  %p4949_p10 = scmp.lt.u32.totalorder %s4947_s27, %s4942_s25 }
  0x65   : > { %p4951_p3 = scmp.lt.u32.totalorder %s4942_s25, %s5434_s21 }
  0x66   : > { %p4945_p1 = pnand %p4944_p6, %p4943_p2  ;;  %p4950_p12 = por %p4949_p10, %p4948_p7 }
  0x68   : > { %p4946_p5 = pneg %p4945_p1  ;;  %p4952_p8 = por %p4951_p3, %p4950_p12 }
  0x6a   : > { %p4953_p9 = pnand %p4952_p8, %p4946_p5 }
  0x6c   : > { %4956 = shalt.err (!%p4953_p9)
}
  0x6d   : > { %s4957_s1 = scalar_lea.vmem %s5399_s2, 512  ;;  %s5158_s4 = smov [#allocation4]  }
  0x6e   : > { %p4958_p2 = scmp.ne.s32.totalorder %s5399_s2, %s4957_s1  ;;  %s4962_s18 = sshll.u32 %s5158_s4, 4  ;;  %s4963_s18 = int_to_ptr.vmem [resolvable:$false] %s4962_s18 }
  0x6f   : > { %s4964_s28 = scalar_lea.vmem %s4963_s18, 1024  ;;  %p4965_p0 = scmp.lt.s32.totalorder %s5399_s2, %s4963_s18 }
  0x70   : > { %p4960_p1 = pnand %p4958_p2, %p4944_p6  ;;  %p4966_p7 = scmp.lt.s32.totalorder %s4964_s28, %s4957_s1 }
  0x72   : > { %p4961_p11 = pneg %p4960_p1  ;;  %p4967_p10 = por %p4966_p7, %p4965_p0 }
  0x74   : > { %p4968_p12 = pnand %p4967_p10, %p4961_p11 }
  0x76   : > { %4971 = shalt.err (!%p4968_p12)
}
  0x77   : > { %4187 = dma.hbm_to_vmem [thread:$0]  (!%p5395_p13), %s5434_s21, 512, %s5399_s2, %s258_s14  }
  0x78   : > { %s144_s25 = ssub.s32 %s5414_s8, %s5417_s29  ;;  %s3703_s19 = sshll.u32 %s301_s16, 10 }
  0x79   : > { %p145_p0 = scmp.eq.s32.totalorder %s144_s25, 0  ;;  %s6204_s10 = sadd.s32 1, %s5124_s0 }
  0x7a   : > { %s4172_s27 = scalar_select %p5427_p4, [#allocation3], [#allocation13] }
  0x7b   : > { %s5476_s1 = scalar_select %p145_p0, %s5124_s0, %s6204_s10  }
  0x7c   : > { %s4173_s4 = scalar_select %p5427_p4, %s5152_s22, 0 }
  0x7d   : > { %p6205_p11 = scmp.lt.s32.totalorder %s5152_s22, 4  ;;  %s303_s8 = scalar_lea.vmem [#allocation8], %s3703_s19 }
  0x7e   : > { %s311_s29 = sshll.u32 %s303_s8, 4  ;;  %s5494_s16 = sld [smem:[#allocation3 + %s5152_s22]]  ;;  %s5496_s29 = int_to_ptr.vmem [resolvable:$true] %s311_s29 }
  0x7f   : > { %s6254_s27 = smov (!%p6205_p11, %s4172_s27), [#allocation17]  ;;  %p6206_p9 = pmov %p6205_p11 }
  0x80   : > { %s5499_s14 = sld [smem:[#allocation3 + %s5282_s24]] }
  0x81   : > { %s6256_s4 = smov (!%p6206_p9, %s4173_s4), 0  ;;  %p6207_p13 = pmov %p6206_p9 }
  0x82   : > { %s304_s2 = sld [smem:[%s6254_s27 + %s6256_s4]] }
  0x83   : > { %p5489_p6 = pnand %p6207_p13, %p5427_p4  ;;  %s6209_s5 = sld [smem:[#allocation34_spill]] }
  0x84   : > { %p188_p4 = scmp.ne.s32.totalorder %s5108_s12, %s5104_s11 }
  0x85   : > { %p4974_p8 = pneg %p5489_p6 }
  0x88   : > { %s4114_s18 = sshll.u32 %s304_s2, 14 }
  0x89   : > { %s5506_s25 = scalar_lea.hbm %s6209_s5, %s4114_s18  ;;  %s4977_s4 = scalar_lea.hbm %s6209_s5, 49152 }
  0x8a   : > { %s4972_s19 = scalar_lea.hbm %s5506_s25, 16384  ;;  %p4978_p7 = scmp.lt.u32.totalorder %s5506_s25, %s6209_s5 }
  0x8b   : > { %p4973_p3 = scmp.ne.s32.totalorder %s5506_s25, %s4972_s19  ;;  %p4979_p10 = scmp.lt.u32.totalorder %s4977_s4, %s4972_s19 }
  0x8c   : > { %p4981_p0 = scmp.lt.u32.totalorder %s4972_s19, %s5506_s25 }
  0x8d   : > { %p4975_p2 = pnand %p4974_p8, %p4973_p3  ;;  %p4980_p12 = por %p4979_p10, %p4978_p7 }
  0x8f   : > { %p4976_p1 = pneg %p4975_p2  ;;  %p4982_p11 = por %p4981_p0, %p4980_p12 }
  0x91   : > { %p4983_p9 = pnand %p4982_p11, %p4976_p1 }
  0x93   : > { %4986 = shalt.err (!%p4983_p9)
}
  0x94   : > { %s4987_s18 = scalar_lea.vmem %s5496_s29, 16384  ;;  %s5159_s28 = smov [#allocation8]  }
  0x95   : > { %p4988_p13 = scmp.ne.s32.totalorder %s5496_s29, %s4987_s18  ;;  %s4992_s30 = sshll.u32 %s5159_s28, 4  ;;  %s4993_s30 = int_to_ptr.vmem [resolvable:$false] %s4992_s30 }
  0x96   : > { %s4994_s27 = scalar_lea.vmem %s4993_s30, 32768  ;;  %p4995_p5 = scmp.lt.s32.totalorder %s5496_s29, %s4993_s30 }
  0x97   : > { %p4990_p3 = pnand %p4988_p13, %p4974_p8  ;;  %p4996_p7 = scmp.lt.s32.totalorder %s4994_s27, %s4987_s18 }
  0x99   : > { %p4991_p2 = pneg %p4990_p3  ;;  %p4997_p10 = por %p4996_p7, %p4995_p5 }
  0x9b   : > { %p4998_p12 = pnand %p4997_p10, %p4991_p2 }
  0x9d   : > { %5001 = shalt.err (!%p4998_p12)
}
  0x9e   : > { %s6210_s19 = smov 16   ;;  %s6211_s10 = smov 256  }
  0x9f   : > { %4197 = dma.hbm_to_vmem [thread:$0]  (!%p5489_p6), %s5506_s25, 16384, %s5496_s29, %s5340_s9, %s6211_s10, %s6211_s10, %s6210_s19  }
  0xa0   : > { %p6212_p5 = scmp.eq.s32.totalorder %s5279_s23, 0  ;;  %s175_s4 = sadd.s32 1, %s5112_s13 }
  0xa1   : > { %s321_s2 = sand.u32 1, %s5112_s13   ;;  %s172_s8 = ssub.s32 %s5494_s16, %s5499_s14 }
  0xa2   : > { %p5544_p8 = por %p188_p4, %p6212_p5  ;;  %p6214_p1 = scmp.eq.s32.totalorder %s5152_s22, 0 }
  0xa3   : > { %p6215_p0 = scmp.ne.s32.totalorder %s5112_s13, %s5108_s12  ;;  %p173_p9 = scmp.eq.s32.totalorder %s172_s8, 0 }
  0xa4   : > { %s3706_s18 = sshll.u32 %s321_s2, 10  ;;  %p6216_p13 = scmp.lt.s32.totalorder %s5152_s22, 4 }
  0xa5   : > { %p184_p11 = por %p6215_p0, %p6214_p1  ;;  %s325_s14 = scalar_lea.vmem [#allocation9], %s3706_s18 }
  0xa6   : > { %s5564_s11 = scalar_select %p173_p9, %s5112_s13, %s175_s4  }
  0xa7   : > { %p5559_p3 = pnand %p6216_p13, %p184_p11  ;;  %p6218_p6 = pmov %p6216_p13 }
  0xa8   : > { %s4175_s9 = scalar_select %p184_p11, [#allocation3], [#allocation14] }
  0xa9   : > { %s4176_s29 = scalar_select %p184_p11, %s5152_s22, 0 }
  0xaa   : > { %s6258_s9 = smov (!%p6218_p6, %s4175_s9), [#allocation18]  ;;  %p6219_p4 = pmov %p6218_p6 }
  0xab   : > { %s333_s25 = sshll.u32 %s325_s14, 4  ;;  %s5578_s4 = scalar_lea.sflag [#allocation10], %s321_s2  ;;  %s5571_s25 = int_to_ptr.vmem [resolvable:$true] %s333_s25 }
  0xac   : > { %s6260_s29 = smov (!%p6219_p4, %s4176_s29), 0  ;;  %p5004_p7 = pneg %p5559_p3 }
  0xad   : > { %s326_s16 = sld [smem:[%s6258_s9 + %s6260_s29]]  ;;  %s5007_s9 = scalar_lea.hbm %s6157_s6, 49152 }
  0xb3   : > { %s4115_s30 = sshll.u32 %s326_s16, 14 }
  0xb4   : > { %s5576_s3 = scalar_lea.hbm %s6157_s6, %s4115_s30 }
  0xb5   : > { %s5002_s5 = scalar_lea.hbm %s5576_s3, 16384  ;;  %p5008_p5 = scmp.lt.u32.totalorder %s5576_s3, %s6157_s6 }
  0xb6   : > { %p5003_p2 = scmp.ne.s32.totalorder %s5576_s3, %s5002_s5  ;;  %p5009_p1 = scmp.lt.u32.totalorder %s5007_s9, %s5002_s5 }
  0xb7   : > { %p5011_p11 = scmp.lt.u32.totalorder %s5002_s5, %s5576_s3 }
  0xb8   : > { %p5005_p10 = pnand %p5004_p7, %p5003_p2  ;;  %p5010_p0 = por %p5009_p1, %p5008_p5 }
  0xba   : > { %p5006_p12 = pneg %p5005_p10  ;;  %p5012_p9 = por %p5011_p11, %p5010_p0 }
  0xbc   : > { %p5013_p13 = pnand %p5012_p9, %p5006_p12 }
  0xbe   : > { %5016 = shalt.err (!%p5013_p13)
}
  0xbf   : > { %s5017_s2 = scalar_lea.vmem %s5571_s25, 16384  ;;  %s5160_s14 = smov [#allocation9]  }
  0xc0   : > { %p5018_p6 = scmp.ne.s32.totalorder %s5571_s25, %s5017_s2  ;;  %s5022_s30 = sshll.u32 %s5160_s14, 4  ;;  %s5023_s30 = int_to_ptr.vmem [resolvable:$false] %s5022_s30 }
  0xc1   : > { %s5024_s27 = scalar_lea.vmem %s5023_s30, 32768  ;;  %p5025_p10 = scmp.lt.s32.totalorder %s5571_s25, %s5023_s30 }
  0xc2   : > { %p5020_p4 = pnand %p5018_p6, %p5004_p7  ;;  %p5026_p5 = scmp.lt.s32.totalorder %s5024_s27, %s5017_s2 }
  0xc4   : > { %p5021_p2 = pneg %p5020_p4  ;;  %p5027_p1 = por %p5026_p5, %p5025_p10 }
  0xc6   : > { %p5028_p0 = pnand %p5027_p1, %p5021_p2 }
  0xc8   : > { %5031 = shalt.err (!%p5028_p0)
}
  0xc9   : > { %4202 = dma.hbm_to_vmem [thread:$0]  (!%p5559_p3), %s5576_s3, 16384, %s5571_s25, %s5578_s4, %s6211_s10, %s6211_s10, %s6210_s19  }
  0xca   : > { %p6220_p7 = scmp.ne.s32.totalorder %s6188_s26, 0 }
  0xcb   : > { %s347_s5 = sand.u32 (!%p6220_p7), 1, %s5144_s20   ;;  %p6221_p12 = scmp.ne.s32.totalorder (!%p6220_p7), %s6193_s17, 0 }
  0xcc   : > { %345 = sbr.rel (%p6220_p7) target bundleno = 1155 (0x483), region = 44  ;;  %s3710_s8 = sshll.u32 (!%p6220_p7), %s347_s5, 5 }
  0xcd   : > { %s348_s22 = scalar_lea.sflag (!%p6220_p7), [#allocation5], %s347_s5  ;;  %s5612_s18 = scalar_lea.vmem (!%p6220_p7), [#allocation4], %s3710_s8 }
  0xd3   : > { %5087 = dma.done.wait (%p6221_p12), %s348_s22, 512  }
  0xd4   : > { %5089 = vsyncadd (%p6221_p12), %s348_s22, 4294966784  ;;  %s6222_s28 = sld [smem:[#allocation24_spill]]  ;;  %s6223_s9 = sld [smem:[#allocation27_spill]] }
  0xd5   : > { %s356_s29 = sand.u32 1, %s5279_s23  }
  0xd6   : > { %s357_s26 = scalar_lea.sflag [#allocation7], %s356_s29 }
  0xda   : > { %s358_s3 = sand.u32 1, %s6222_s28   ;;  %p6224_p3 = scmp.ne.s32.totalorder %s6223_s9, 0 }
  0xdb   : > { %s3711_s19 = sshll.u32 %s358_s3, 10 }
  0xdc   : > { %s5620_s10 = scalar_lea.vmem [#allocation6], %s3711_s19 }
  0xdd   : > { %5091 = dma.done.wait (%p6224_p3), %s357_s26, 16384  }
  0xde   : > { %5093 = vsyncadd (%p6224_p3), %s357_s26, 4294950912  ;;  %s367_s25 = sand.u32 1, %s5120_s15   ;;  %p6225_p11 = scmp.ne.s32.totalorder %s6203_s7, 0 }
  0xdf   : > { %s3712_s4 = sshll.u32 %s367_s25, 10 }
  0xe0   : > { %s5627_s17 = scalar_lea.vmem [#allocation8], %s3712_s4 }
  0xe1   : > { %5095 = dma.done.wait (%p6225_p11), %s357_s26, 16384  }
  0xe2   : > { %5097 = vsyncadd (%p6225_p11), %s357_s26, 4294950912  ;;  %s374_s16 = sand.u32 1, %s5108_s12  }
  0xe3   : > { %s3713_s2 = sshll.u32 %s374_s16, 10  ;;  %s375_s14 = scalar_lea.sflag [#allocation10], %s374_s16 }
  0xe4   : > { %s5634_s30 = scalar_lea.vmem [#allocation9], %s3713_s2 }
  0xe5   : > { %5099 = dma.done.wait (%p5544_p8), %s375_s14, 16384  }
  0xe6   : > { %5101 = vsyncadd (%p5544_p8), %s375_s14, 4294950912  ;;  %v4316_v0 = vld [vmem:[%s5620_s10 + $0x4] ss:$16 sps:$4 sm:$0xff]   ;;  %v4318_v1 = vld [vmem:[%s5620_s10 + $0xc] ss:$16 sps:$4 sm:$0xff]   ;;  %v5161_v8 = vmov 0  }
  0xe7   : > { %1354 = vmatprep.subr.bf16.mxu0 %v4316_v0  ;;  %v4320_v2 = vld [vmem:[%s5620_s10] ss:$16 sps:$4 sm:$0xff]   ;;  %v4321_v3 = vld [vmem:[%s5620_s10 + $0x8] ss:$16 sps:$4 sm:$0xff]   ;;  %1440 = vmatprep.subr.bf16.mxu1 %v4318_v1  ;;  %v4322_v4 = vld [vmem:[%s5620_s10 + $0x24] ss:$16 sps:$4 sm:$0xff]  }
  0xe8   : > { %1355 = vmatpush1.bf16.msra.mxu0 %v4320_v2  ;;  %1441 = vmatpush1.bf16.msra.mxu1 %v4321_v3  ;;  %v4324_v5 = vld [vmem:[%s5620_s10 + $0x2c] ss:$16 sps:$4 sm:$0xff]   ;;  %v4326_v6 = vld [vmem:[%s5620_s10 + $0x20] ss:$16 sps:$4 sm:$0xff]   ;;  %v4327_v7 = vld [vmem:[%s5620_s10 + $0x28] ss:$16 sps:$4 sm:$0xff]  }
  0xe9   : > { %1356 = vmatprep.subr.bf16.mxu0 %v4322_v4  ;;  %4313 = vset.pattern.permute.xlu0 %v5161_v8  ;;  %v4328_v9 = vld [vmem:[%s5620_s10 + $0x44] ss:$16 sps:$4 sm:$0xff]   ;;  %v5162_v10 = vmov 1   ;;  %v4330_v11 = vld [vmem:[%s5620_s10 + $0x4c] ss:$16 sps:$4 sm:$0xff]   ;;  %s3714_s7 = sshll.u32 %s5279_s23, 1 }
  0xea   : > { %1442 = vmatprep.subr.bf16.mxu1 %v4324_v5  ;;  %4314 = vset.pattern.permute.xlu1 %v5162_v10  ;;  %v4332_v12 = vld [vmem:[%s5620_s10 + $0x40] ss:$16 sps:$4 sm:$0xff]   ;;  %v4333_v13 = vld [vmem:[%s5620_s10 + $0x48] ss:$16 sps:$4 sm:$0xff]   ;;  %v4334_v14 = vld [vmem:[%s5620_s10 + $0x64] ss:$16 sps:$4 sm:$0xff]  }
  0xeb   : > { %v4336_v15 = vld [vmem:[%s5620_s10 + $0x6c] ss:$16 sps:$4 sm:$0xff]   ;;  %v4338_v16 = vld [vmem:[%s5620_s10 + $0x60] ss:$16 sps:$4 sm:$0xff]   ;;  %v4339_v17 = vld [vmem:[%s5620_s10 + $0x68] ss:$16 sps:$4 sm:$0xff]  }
  0xec   : > { %1357 = vmatpush1.bf16.msra.mxu0 %v4326_v6  ;;  %1443 = vmatpush1.bf16.msra.mxu1 %v4327_v7  ;;  %v4340_v18 = vld [vmem:[%s5620_s10 + $0x84] ss:$16 sps:$4 sm:$0xff]   ;;  %v4342_v19 = vld [vmem:[%s5620_s10 + $0x8c] ss:$16 sps:$4 sm:$0xff]   ;;  %v4344_v20 = vld [vmem:[%s5620_s10 + $0x80] ss:$16 sps:$4 sm:$0xff]  }
  0xed   : > { %1358 = vmatprep.subr.bf16.mxu0 %v4328_v9  ;;  %1444 = vmatprep.subr.bf16.mxu1 %v4330_v11  ;;  %v4345_v21 = vld [vmem:[%s5620_s10 + $0x88] ss:$16 sps:$4 sm:$0xff]   ;;  %v4346_v22 = vld [vmem:[%s5620_s10 + $0xa4] ss:$16 sps:$4 sm:$0xff]   ;;  %v4348_v23 = vld [vmem:[%s5620_s10 + $0xac] ss:$16 sps:$4 sm:$0xff]  }
  0xee   : > { %v4350_v24 = vld [vmem:[%s5620_s10 + $0xa0] ss:$16 sps:$4 sm:$0xff]   ;;  %v4351_v25 = vld [vmem:[%s5620_s10 + $0xa8] ss:$16 sps:$4 sm:$0xff]   ;;  %v4352_v26 = vld [vmem:[%s5620_s10 + $0xc4] ss:$16 sps:$4 sm:$0xff]  }
  0xef   : > { %v4354_v27 = vld [vmem:[%s5620_s10 + $0xcc] ss:$16 sps:$4 sm:$0xff]   ;;  %v4356_v28 = vld [vmem:[%s5620_s10 + $0xc0] ss:$16 sps:$4 sm:$0xff]   ;;  %v4357_v29 = vld [vmem:[%s5620_s10 + $0xc8] ss:$16 sps:$4 sm:$0xff]  }
  0xf0   : > { %1359 = vmatpush1.bf16.msra.mxu0 %v4332_v12  ;;  %1445 = vmatpush1.bf16.msra.mxu1 %v4333_v13  ;;  %v4358_v30 = vld [vmem:[%s5620_s10 + $0xe4] ss:$16 sps:$4 sm:$0xff]   ;;  %v4360_v31 = vld [vmem:[%s5620_s10 + $0xec] ss:$16 sps:$4 sm:$0xff]   ;;  %v4362_v32 = vld [vmem:[%s5620_s10 + $0xe0] ss:$16 sps:$4 sm:$0xff]  }
  0xf1   : > { %1360 = vmatprep.subr.bf16.mxu0 %v4334_v14  ;;  %1446 = vmatprep.subr.bf16.mxu1 %v4336_v15  ;;  %v4363_v33 = vld [vmem:[%s5620_s10 + $0xe8] ss:$16 sps:$4 sm:$0xff]   ;;  %v4364_v34 = vld [vmem:[%s5620_s10 + $0x104] ss:$16 sps:$4 sm:$0xff]   ;;  %v4366_v35 = vld [vmem:[%s5620_s10 + $0x10c] ss:$16 sps:$4 sm:$0xff]  }
  0xf2   : > { %p435_p8 = scmp.lt.s32.totalorder %s3714_s7, 7  ;;  %v4368_v36 = vld [vmem:[%s5620_s10 + $0x100] ss:$16 sps:$4 sm:$0xff]   ;;  %v4369_v37 = vld [vmem:[%s5620_s10 + $0x108] ss:$16 sps:$4 sm:$0xff]   ;;  %s6226_s5 = sld [smem:[#allocation30_spill]] }
  0xf3   : > { %v4370_v38 = vld [vmem:[%s5620_s10 + $0x124] ss:$16 sps:$4 sm:$0xff]   ;;  %v4372_v39 = vld [vmem:[%s5620_s10 + $0x12c] ss:$16 sps:$4 sm:$0xff]   ;;  %v4374_v40 = vld [vmem:[%s5620_s10 + $0x120] ss:$16 sps:$4 sm:$0xff]  }
  0xf4   : > { %1361 = vmatpush1.bf16.msra.mxu0 %v4338_v16  ;;  %1447 = vmatpush1.bf16.msra.mxu1 %v4339_v17  ;;  %s6262_s7 = smov (!%p435_p8, %s3714_s7), 7  ;;  %v4375_v41 = vld [vmem:[%s5620_s10 + $0x128] ss:$16 sps:$4 sm:$0xff]   ;;  %v4376_v42 = vld [vmem:[%s5620_s10 + $0x144] ss:$16 sps:$4 sm:$0xff]   ;;  %s6227_s29 = sld [smem:[#allocation31_spill]] }
  0xf5   : > { %1362 = vmatprep.subr.bf16.mxu0 %v4340_v18  ;;  %1448 = vmatprep.subr.bf16.mxu1 %v4342_v19  ;;  %v4378_v43 = vld [vmem:[%s5620_s10 + $0x14c] ss:$16 sps:$4 sm:$0xff]   ;;  %s4116_s23 = sshll.u32 %s6262_s7, 4  ;;  %v4380_v44 = vld [vmem:[%s5620_s10 + $0x140] ss:$16 sps:$4 sm:$0xff]   ;;  %s3718_s22 = sshll.u32 %s6262_s7, 3 }
  0xf6   : > { %v4381_v45 = vld [vmem:[%s5620_s10 + $0x148] ss:$16 sps:$4 sm:$0xff]   ;;  %v4382_v46 = vld [vmem:[%s5620_s10 + $0x164] ss:$16 sps:$4 sm:$0xff]   ;;  %v4384_v47 = vld [vmem:[%s5620_s10 + $0x16c] ss:$16 sps:$4 sm:$0xff]  }
  0xf7   : > { %v4386_v48 = vld [vmem:[%s5620_s10 + $0x160] ss:$16 sps:$4 sm:$0xff]   ;;  %v4387_v49 = vld [vmem:[%s5620_s10 + $0x168] ss:$16 sps:$4 sm:$0xff]   ;;  %v4388_v51 = vld [vmem:[%s5620_s10 + $0x184] ss:$16 sps:$4 sm:$0xff]  }
  0xf8   : > { %1363 = vmatpush1.bf16.msra.mxu0 %v4344_v20  ;;  %1449 = vmatpush1.bf16.msra.mxu1 %v4345_v21  ;;  %s5693_s8 = scalar_lea.vmem %s6226_s5, %s4116_s23  ;;  %v4390_v52 = vld [vmem:[%s5620_s10 + $0x18c] ss:$16 sps:$4 sm:$0xff]   ;;  %v4392_v53 = vld [vmem:[%s5620_s10 + $0x180] ss:$16 sps:$4 sm:$0xff]   ;;  %v4393_v54 = vld [vmem:[%s5620_s10 + $0x188] ss:$16 sps:$4 sm:$0xff]  }
  0xf9   : > { %1364 = vmatprep.subr.bf16.mxu0 %v4346_v22  ;;  %1450 = vmatprep.subr.bf16.mxu1 %v4348_v23  ;;  %v4414_v50 = vld [vmem:[%s5693_s8 + $0x4] ss:$16 sps:$4 sm:$0xff]   ;;  %v4396_v56 = vld [vmem:[%s5620_s10 + $0x1ac] ss:$16 sps:$4 sm:$0xff]   ;;  %v4398_v57 = vld [vmem:[%s5620_s10 + $0x1a0] ss:$16 sps:$4 sm:$0xff]  }
  0xfa   : > { %1386 = vmatprep.mubr.bf16.mxu0 %v4414_v50  ;;  %1472 = vmatprep.mubr.bf16.mxu1 %v4414_v50  ;;  %v4394_v55 = vld [vmem:[%s5620_s10 + $0x1a4] ss:$16 sps:$4 sm:$0xff]   ;;  %v4399_v58 = vld [vmem:[%s5620_s10 + $0x1a8] ss:$16 sps:$4 sm:$0xff]   ;;  %v4402_v60 = vld [vmem:[%s5620_s10 + $0x1cc] ss:$16 sps:$4 sm:$0xff]   ;;  %s445_s3 = scalar_lea.vmem %s6227_s29, %s3718_s22 }
  0xfb   : > { %v4400_v59 = vld [vmem:[%s5620_s10 + $0x1c4] ss:$16 sps:$4 sm:$0xff]   ;;  %v4404_v61 = vld [vmem:[%s5620_s10 + $0x1c0] ss:$16 sps:$4 sm:$0xff]   ;;  %v4405_v62 = vld [vmem:[%s5620_s10 + $0x1c8] ss:$16 sps:$4 sm:$0xff]  }
  0xfc   : > { %1365 = vmatpush1.bf16.msra.mxu0 %v4350_v24  ;;  %1451 = vmatpush1.bf16.msra.mxu1 %v4351_v25  ;;  %v4406_v63 = vld [vmem:[%s5620_s10 + $0x1e4] ss:$16 sps:$4 sm:$0xff]   ;;  %v4408_v0 = vld [vmem:[%s5620_s10 + $0x1ec] ss:$16 sps:$4 sm:$0xff]   ;;  %v4410_v1 = vld [vmem:[%s5620_s10 + $0x1e0] ss:$16 sps:$4 sm:$0xff]  }
  0xfd   : > { %1366 = vmatprep.subr.bf16.mxu0 %v4352_v26  ;;  %1452 = vmatprep.subr.bf16.mxu1 %v4354_v27  ;;  %v4411_v2 = vld [vmem:[%s5620_s10 + $0x1e8] ss:$16 sps:$4 sm:$0xff]   ;;  %v4417_v3 = vld [vmem:[%s5620_s10 + $0x204] ss:$16 sps:$4 sm:$0xff]   ;;  %v4420_v4 = vld [vmem:[%s5620_s10 + $0x20c] ss:$16 sps:$4 sm:$0xff]  }
  0xfe   : > { %v4412_v5 = vld [vmem:[%s5693_s8] ss:$16 sps:$4 sm:$0xff]   ;;  %v4418_v7 = vld [vmem:[%s5620_s10 + $0x208] ss:$16 sps:$4 sm:$0xff]   ;;  %v4423_v8 = vld [vmem:[%s5620_s10 + $0x224] ss:$16 sps:$4 sm:$0xff]  }
  0xff   : > { %v4415_v6 = vld [vmem:[%s5620_s10 + $0x200] ss:$16 sps:$4 sm:$0xff]   ;;  %v4426_v9 = vld [vmem:[%s5620_s10 + $0x22c] ss:$16 sps:$4 sm:$0xff]   ;;  %v4424_v12 = vld [vmem:[%s5620_s10 + $0x228] ss:$16 sps:$4 sm:$0xff]  }
 0x100   : > { %1367 = vmatpush1.bf16.msra.mxu0 %v4356_v28  ;;  %1453 = vmatpush1.bf16.msra.mxu1 %v4357_v29  ;;  %v4421_v11 = vld [vmem:[%s5620_s10 + $0x220] ss:$16 sps:$4 sm:$0xff]   ;;  %v4429_v13 = vld [vmem:[%s5620_s10 + $0x244] ss:$16 sps:$4 sm:$0xff]   ;;  %v4432_v14 = vld [vmem:[%s5620_s10 + $0x24c] ss:$16 sps:$4 sm:$0xff]  }
 0x101   : > { %1368 = vmatprep.subr.bf16.mxu0 %v4358_v30  ;;  %1454 = vmatprep.subr.bf16.mxu1 %v4360_v31  ;;  %v4427_v15 = vld [vmem:[%s5620_s10 + $0x240] ss:$16 sps:$4 sm:$0xff]   ;;  %v4430_v16 = vld [vmem:[%s5620_s10 + $0x248] ss:$16 sps:$4 sm:$0xff]   ;;  %v4435_v17 = vld [vmem:[%s5620_s10 + $0x264] ss:$16 sps:$4 sm:$0xff]  }
 0x102   : > { %v4438_v18 = vld [vmem:[%s5620_s10 + $0x26c] ss:$16 sps:$4 sm:$0xff]   ;;  %v4433_v19 = vld [vmem:[%s5620_s10 + $0x260] ss:$16 sps:$4 sm:$0xff]   ;;  %v4436_v20 = vld [vmem:[%s5620_s10 + $0x268] ss:$16 sps:$4 sm:$0xff]  }
 0x103   : > { %v4441_v21 = vld [vmem:[%s5620_s10 + $0x284] ss:$16 sps:$4 sm:$0xff]   ;;  %v4444_v22 = vld [vmem:[%s5620_s10 + $0x28c] ss:$16 sps:$4 sm:$0xff]   ;;  %v4439_v23 = vld [vmem:[%s5620_s10 + $0x280] ss:$16 sps:$4 sm:$0xff]  }
 0x104   : > { %1369 = vmatpush1.bf16.msra.mxu0 %v4362_v32  ;;  %1455 = vmatpush1.bf16.msra.mxu1 %v4363_v33  ;;  %v4442_v24 = vld [vmem:[%s5620_s10 + $0x288] ss:$16 sps:$4 sm:$0xff]   ;;  %v4447_v25 = vld [vmem:[%s5620_s10 + $0x2a4] ss:$16 sps:$4 sm:$0xff]   ;;  %v4450_v26 = vld [vmem:[%s5620_s10 + $0x2ac] ss:$16 sps:$4 sm:$0xff]  }
 0x105   : > { %1370 = vmatprep.subr.bf16.mxu0 %v4364_v34  ;;  %1456 = vmatprep.subr.bf16.mxu1 %v4366_v35  ;;  %v4445_v27 = vld [vmem:[%s5620_s10 + $0x2a0] ss:$16 sps:$4 sm:$0xff]   ;;  %v4448_v28 = vld [vmem:[%s5620_s10 + $0x2a8] ss:$16 sps:$4 sm:$0xff]   ;;  %v4453_v29 = vld [vmem:[%s5620_s10 + $0x2c4] ss:$16 sps:$4 sm:$0xff]  }
 0x106   : > { %v4456_v30 = vld [vmem:[%s5620_s10 + $0x2cc] ss:$16 sps:$4 sm:$0xff]   ;;  %v4451_v31 = vld [vmem:[%s5620_s10 + $0x2c0] ss:$16 sps:$4 sm:$0xff]   ;;  %v4454_v33 = vld [vmem:[%s5620_s10 + $0x2c8] ss:$16 sps:$4 sm:$0xff]  }
 0x107   : > { %v4513_v32 = vld [vmem:[%s5693_s8 + $0xc] ss:$16 sps:$4 sm:$0xff]   ;;  %v462_v34 = vld [vmem:[%s445_s3] sm:$0xff]  ;;  %s4117_s19 = sshll.u32 %s6262_s7, 5  ;;  %s6228_s25 = sld [smem:[#allocation35_spill]] }
 0x108   : > { %1371 = vmatpush1.bf16.msra.mxu0 %v4368_v36  ;;  %1457 = vmatpush1.bf16.msra.mxu1 %v4369_v37  ;;  %v4459_v35 = vld [vmem:[%s5620_s10 + $0x2e4] ss:$16 sps:$4 sm:$0xff]   ;;  %v4462_v36 = vld [vmem:[%s5620_s10 + $0x2ec] ss:$16 sps:$4 sm:$0xff]   ;;  %v4457_v37 = vld [vmem:[%s5620_s10 + $0x2e0] ss:$16 sps:$4 sm:$0xff]  }
 0x109   : > { %1372 = vmatprep.subr.bf16.mxu0 %v4370_v38  ;;  %1458 = vmatprep.subr.bf16.mxu1 %v4372_v39  ;;  %v4460_v38 = vld [vmem:[%s5620_s10 + $0x2e8] ss:$16 sps:$4 sm:$0xff]   ;;  %v4475_v50 = vld [vmem:[%s5620_s10 + $0x340] ss:$16 sps:$4 sm:$0xff]  }
 0x10a   : > { %470 = vperm.xlu0 %4313, %v462_v34   ;;  %527 = vperm.xlu1 %4314, %v462_v34   ;;  %v463_v39 = vld [vmem:[%s445_s3 + $0x8] sm:$0xff] }
 0x10b   : > { %v4555_v34 = vld [vmem:[%s5627_s17 + $0xcc] ss:$16 sps:$4 sm:$0xff]  }
 0x10c   : > { %1373 = vmatpush1.bf16.msra.mxu0 %v4374_v40  ;;  %1459 = vmatpush1.bf16.msra.mxu1 %v4375_v41  ;;  %v4465_v40 = vld [vmem:[%s5620_s10 + $0x304] ss:$16 sps:$4 sm:$0xff]   ;;  %v4468_v41 = vld [vmem:[%s5620_s10 + $0x30c] ss:$16 sps:$4 sm:$0xff]  }
 0x10d   : > { %1374 = vmatprep.subr.bf16.mxu0 %v4376_v42  ;;  %1460 = vmatprep.subr.bf16.mxu1 %v4378_v43  ;;  %v4463_v42 = vld [vmem:[%s5620_s10 + $0x300] ss:$16 sps:$4 sm:$0xff]   ;;  %v4466_v43 = vld [vmem:[%s5620_s10 + $0x308] ss:$16 sps:$4 sm:$0xff]   ;;  %s456_s4 = scalar_lea.vmem %s6228_s25, %s4117_s19 }
 0x10e   : > { %475 = vperm.xlu0 %4313, %v463_v39   ;;  %531 = vperm.xlu1 %4314, %v463_v39   ;;  %v4556_v39 = vld [vmem:[%s5627_s17 + $0xe0] ss:$16 sps:$4 sm:$0xff]  }
 0x110   : > { %1375 = vmatpush1.bf16.msra.mxu0 %v4380_v44  ;;  %1461 = vmatpush1.bf16.msra.mxu1 %v4381_v45  ;;  %v4471_v44 = vld [vmem:[%s5620_s10 + $0x324] ss:$16 sps:$4 sm:$0xff]   ;;  %v4474_v45 = vld [vmem:[%s5620_s10 + $0x32c] ss:$16 sps:$4 sm:$0xff]  }
 0x111   : > { %1376 = vmatprep.subr.bf16.mxu0 %v4382_v46  ;;  %1462 = vmatprep.subr.bf16.mxu1 %v4384_v47  ;;  %v4469_v46 = vld [vmem:[%s5620_s10 + $0x320] ss:$16 sps:$4 sm:$0xff]   ;;  %v4472_v47 = vld [vmem:[%s5620_s10 + $0x328] ss:$16 sps:$4 sm:$0xff]  }
 0x112   : > { %4315 = vset.pattern.permute.xlu0 %v5162_v10  ;;  %v4483_v10 = vld [vmem:[%s5620_s10 + $0x364] ss:$16 sps:$4 sm:$0xff]  }
 0x114   : > { %1377 = vmatpush1.bf16.msra.mxu0 %v4386_v48  ;;  %1463 = vmatpush1.bf16.msra.mxu1 %v4387_v49  ;;  %v4477_v48 = vld [vmem:[%s5620_s10 + $0x344] ss:$16 sps:$4 sm:$0xff]   ;;  %v4480_v49 = vld [vmem:[%s5620_s10 + $0x34c] ss:$16 sps:$4 sm:$0xff]  }
 0x115   : > { %1378 = vmatprep.subr.bf16.mxu0 %v4388_v51  ;;  %1464 = vmatprep.subr.bf16.mxu1 %v4390_v52  ;;  %v4478_v51 = vld [vmem:[%s5620_s10 + $0x348] ss:$16 sps:$4 sm:$0xff]   ;;  %v4486_v52 = vld [vmem:[%s5620_s10 + $0x36c] ss:$16 sps:$4 sm:$0xff]  }
 0x118   : > { %1379 = vmatpush1.bf16.msra.mxu0 %v4392_v53  ;;  %1465 = vmatpush1.bf16.msra.mxu1 %v4393_v54  ;;  %v4481_v53 = vld [vmem:[%s5620_s10 + $0x360] ss:$16 sps:$4 sm:$0xff]   ;;  %v4484_v54 = vld [vmem:[%s5620_s10 + $0x368] ss:$16 sps:$4 sm:$0xff]  }
 0x119   : > { %1380 = vmatprep.subr.bf16.mxu0 %v4394_v55  ;;  %1466 = vmatprep.subr.bf16.mxu1 %v4396_v56  ;;  %v4489_v55 = vld [vmem:[%s5620_s10 + $0x384] ss:$16 sps:$4 sm:$0xff]   ;;  %v4492_v56 = vld [vmem:[%s5620_s10 + $0x38c] ss:$16 sps:$4 sm:$0xff]  }
 0x11c   : > { %1381 = vmatpush1.bf16.msra.mxu0 %v4398_v57  ;;  %1467 = vmatpush1.bf16.msra.mxu1 %v4399_v58  ;;  %v4487_v57 = vld [vmem:[%s5620_s10 + $0x380] ss:$16 sps:$4 sm:$0xff]   ;;  %v4490_v58 = vld [vmem:[%s5620_s10 + $0x388] ss:$16 sps:$4 sm:$0xff]  }
 0x11d   : > { %1382 = vmatprep.subr.bf16.mxu0 %v4400_v59  ;;  %1468 = vmatprep.subr.bf16.mxu1 %v4402_v60  ;;  %v4495_v59 = vld [vmem:[%s5620_s10 + $0x3a4] ss:$16 sps:$4 sm:$0xff]   ;;  %v4498_v60 = vld [vmem:[%s5620_s10 + $0x3ac] ss:$16 sps:$4 sm:$0xff]  }
 0x120   : > { %1383 = vmatpush1.bf16.msra.mxu0 %v4404_v61  ;;  %1469 = vmatpush1.bf16.msra.mxu1 %v4405_v62  ;;  %v4493_v61 = vld [vmem:[%s5620_s10 + $0x3a0] ss:$16 sps:$4 sm:$0xff]   ;;  %v4496_v62 = vld [vmem:[%s5620_s10 + $0x3a8] ss:$16 sps:$4 sm:$0xff]  }
 0x121   : > { %1384 = vmatprep.subr.bf16.mxu0 %v4406_v63  ;;  %1470 = vmatprep.subr.bf16.mxu1 %v4408_v0  ;;  %v4501_v63 = vld [vmem:[%s5620_s10 + $0x3c4] ss:$16 sps:$4 sm:$0xff]   ;;  %v4504_v0 = vld [vmem:[%s5620_s10 + $0x3cc] ss:$16 sps:$4 sm:$0xff]  }
 0x124   : > { %1385 = vmatpush1.bf16.msra.mxu0 %v4410_v1  ;;  %1471 = vmatpush1.bf16.msra.mxu1 %v4411_v2  ;;  %v4499_v1 = vld [vmem:[%s5620_s10 + $0x3c0] ss:$16 sps:$4 sm:$0xff]   ;;  %v4502_v2 = vld [vmem:[%s5620_s10 + $0x3c8] ss:$16 sps:$4 sm:$0xff]  }
 0x125   : > { %1397 = vmatprep.subr.bf16.mxu0 %v4417_v3  ;;  %1483 = vmatprep.subr.bf16.mxu1 %v4420_v4  ;;  %v4507_v3 = vld [vmem:[%s5620_s10 + $0x3e4] ss:$16 sps:$4 sm:$0xff]   ;;  %v4510_v4 = vld [vmem:[%s5620_s10 + $0x3ec] ss:$16 sps:$4 sm:$0xff]  }
 0x127   : > { %1387 = vmatmul.mubr.bf16.vlgmr.msra.gmra.mrb[0].mxu0 %v4412_v5  ;;  %1473 = vmatmul.mubr.bf16.vlgmr.msra.gmra.mrb[0].mxu1 %v4412_v5  ;;  %v4505_v5 = vld [vmem:[%s5620_s10 + $0x3e0] ss:$16 sps:$4 sm:$0xff]  }
 0x128   : > { %1398 = vmatpush1.bf16.msra.mxu0 %v4415_v6  ;;  %1484 = vmatpush1.bf16.msra.mxu1 %v4418_v7  ;;  %v4508_v6 = vld [vmem:[%s5620_s10 + $0x3e8] ss:$16 sps:$4 sm:$0xff]  }
 0x129   : > { %1399 = vmatprep.subr.bf16.mxu0 %v4423_v8  ;;  %1485 = vmatprep.subr.bf16.mxu1 %v4426_v9  ;;  %v4511_v7 = vld [vmem:[%s5693_s8 + $0x8] ss:$16 sps:$4 sm:$0xff]   ;;  %v4516_v8 = vld [vmem:[%s5627_s17 + $0x4] ss:$16 sps:$4 sm:$0xff]   ;;  %v4519_v9 = vld [vmem:[%s5627_s17 + $0xc] ss:$16 sps:$4 sm:$0xff]  }
 0x12a   : > { %1429 = vmatprep.mubr.bf16.mxu0 %v4513_v32  ;;  %1515 = vmatprep.mubr.bf16.mxu1 %v4513_v32  ;;  %v4547_v32 = vld [vmem:[%s5627_s17 + $0xa8] ss:$16 sps:$4 sm:$0xff]  }
 0x12c   : > { %1400 = vmatpush1.bf16.msra.mxu0 %v4421_v11  ;;  %1486 = vmatpush1.bf16.msra.mxu1 %v4424_v12  ;;  %v4514_v11 = vld [vmem:[%s5627_s17] ss:$16 sps:$4 sm:$0xff]   ;;  %v4517_v12 = vld [vmem:[%s5627_s17 + $0x8] ss:$16 sps:$4 sm:$0xff]  }
 0x12d   : > { %1401 = vmatprep.subr.bf16.mxu0 %v4429_v13  ;;  %1487 = vmatprep.subr.bf16.mxu1 %v4432_v14  ;;  %v4522_v13 = vld [vmem:[%s5627_s17 + $0x24] ss:$16 sps:$4 sm:$0xff]   ;;  %v4525_v14 = vld [vmem:[%s5627_s17 + $0x2c] ss:$16 sps:$4 sm:$0xff]  }
 0x130   : > { %1402 = vmatpush1.bf16.msra.mxu0 %v4427_v15  ;;  %1488 = vmatpush1.bf16.msra.mxu1 %v4430_v16  ;;  %v4520_v15 = vld [vmem:[%s5627_s17 + $0x20] ss:$16 sps:$4 sm:$0xff]   ;;  %v4523_v16 = vld [vmem:[%s5627_s17 + $0x28] ss:$16 sps:$4 sm:$0xff]  }
 0x131   : > { %1403 = vmatprep.subr.bf16.mxu0 %v4435_v17  ;;  %1489 = vmatprep.subr.bf16.mxu1 %v4438_v18  ;;  %v4528_v17 = vld [vmem:[%s5627_s17 + $0x44] ss:$16 sps:$4 sm:$0xff]   ;;  %v4531_v18 = vld [vmem:[%s5627_s17 + $0x4c] ss:$16 sps:$4 sm:$0xff]  }
 0x134   : > { %1404 = vmatpush1.bf16.msra.mxu0 %v4433_v19  ;;  %1490 = vmatpush1.bf16.msra.mxu1 %v4436_v20  ;;  %v4526_v19 = vld [vmem:[%s5627_s17 + $0x40] ss:$16 sps:$4 sm:$0xff]   ;;  %v4529_v20 = vld [vmem:[%s5627_s17 + $0x48] ss:$16 sps:$4 sm:$0xff]  }
 0x135   : > { %1405 = vmatprep.subr.bf16.mxu0 %v4441_v21  ;;  %1491 = vmatprep.subr.bf16.mxu1 %v4444_v22  ;;  %v4534_v21 = vld [vmem:[%s5627_s17 + $0x64] ss:$16 sps:$4 sm:$0xff]   ;;  %v4537_v22 = vld [vmem:[%s5627_s17 + $0x6c] ss:$16 sps:$4 sm:$0xff]  }
 0x138   : > { %1406 = vmatpush1.bf16.msra.mxu0 %v4439_v23  ;;  %1492 = vmatpush1.bf16.msra.mxu1 %v4442_v24  ;;  %v4532_v23 = vld [vmem:[%s5627_s17 + $0x60] ss:$16 sps:$4 sm:$0xff]   ;;  %v4535_v24 = vld [vmem:[%s5627_s17 + $0x68] ss:$16 sps:$4 sm:$0xff]  }
 0x139   : > { %1407 = vmatprep.subr.bf16.mxu0 %v4447_v25  ;;  %1493 = vmatprep.subr.bf16.mxu1 %v4450_v26  ;;  %v4540_v25 = vld [vmem:[%s5627_s17 + $0x84] ss:$16 sps:$4 sm:$0xff]   ;;  %v4543_v26 = vld [vmem:[%s5627_s17 + $0x8c] ss:$16 sps:$4 sm:$0xff]  }
 0x13c   : > { %1408 = vmatpush1.bf16.msra.mxu0 %v4445_v27  ;;  %1494 = vmatpush1.bf16.msra.mxu1 %v4448_v28  ;;  %v4538_v27 = vld [vmem:[%s5627_s17 + $0x80] ss:$16 sps:$4 sm:$0xff]   ;;  %v4541_v28 = vld [vmem:[%s5627_s17 + $0x88] ss:$16 sps:$4 sm:$0xff]  }
 0x13d   : > { %1409 = vmatprep.subr.bf16.mxu0 %v4453_v29  ;;  %1495 = vmatprep.subr.bf16.mxu1 %v4456_v30  ;;  %v4546_v29 = vld [vmem:[%s5627_s17 + $0xa4] ss:$16 sps:$4 sm:$0xff]   ;;  %v4549_v30 = vld [vmem:[%s5627_s17 + $0xac] ss:$16 sps:$4 sm:$0xff]  }
 0x140   : > { %1410 = vmatpush1.bf16.msra.mxu0 %v4451_v31  ;;  %1496 = vmatpush1.bf16.msra.mxu1 %v4454_v33  ;;  %v4544_v31 = vld [vmem:[%s5627_s17 + $0xa0] ss:$16 sps:$4 sm:$0xff]   ;;  %v4552_v33 = vld [vmem:[%s5627_s17 + $0xc4] ss:$16 sps:$4 sm:$0xff]  }
 0x141   : > { %1411 = vmatprep.subr.bf16.mxu0 %v4459_v35  ;;  %1497 = vmatprep.subr.bf16.mxu1 %v4462_v36  ;;  %v4550_v35 = vld [vmem:[%s5627_s17 + $0xc0] ss:$16 sps:$4 sm:$0xff]   ;;  %v4553_v36 = vld [vmem:[%s5627_s17 + $0xc8] ss:$16 sps:$4 sm:$0xff]  }
 0x144   : > { %1412 = vmatpush1.bf16.msra.mxu0 %v4457_v37  ;;  %1498 = vmatpush1.bf16.msra.mxu1 %v4460_v38  ;;  %v4558_v37 = vld [vmem:[%s5627_s17 + $0xe4] ss:$16 sps:$4 sm:$0xff]   ;;  %v4561_v38 = vld [vmem:[%s5627_s17 + $0xec] ss:$16 sps:$4 sm:$0xff]  }
 0x145   : > { %1413 = vmatprep.subr.bf16.mxu0 %v4465_v40  ;;  %1499 = vmatprep.subr.bf16.mxu1 %v4468_v41  ;;  %v4559_v40 = vld [vmem:[%s5627_s17 + $0xe8] ss:$16 sps:$4 sm:$0xff]   ;;  %v4564_v41 = vld [vmem:[%s5627_s17 + $0x104] ss:$16 sps:$4 sm:$0xff]  }
 0x148   : > { %1414 = vmatpush1.bf16.msra.mxu0 %v4463_v42  ;;  %1500 = vmatpush1.bf16.msra.mxu1 %v4466_v43  ;;  %v4567_v42 = vld [vmem:[%s5627_s17 + $0x10c] ss:$16 sps:$4 sm:$0xff]   ;;  %v4562_v43 = vld [vmem:[%s5627_s17 + $0x100] ss:$16 sps:$4 sm:$0xff]  }
 0x149   : > { %1415 = vmatprep.subr.bf16.mxu0 %v4471_v44  ;;  %1501 = vmatprep.subr.bf16.mxu1 %v4474_v45  ;;  %v4565_v44 = vld [vmem:[%s5627_s17 + $0x108] ss:$16 sps:$4 sm:$0xff]   ;;  %v4570_v45 = vld [vmem:[%s5627_s17 + $0x124] ss:$16 sps:$4 sm:$0xff]  }
 0x14c   : > { %1416 = vmatpush1.bf16.msra.mxu0 %v4469_v46  ;;  %1502 = vmatpush1.bf16.msra.mxu1 %v4472_v47  ;;  %v4573_v46 = vld [vmem:[%s5627_s17 + $0x12c] ss:$16 sps:$4 sm:$0xff]   ;;  %v4568_v47 = vld [vmem:[%s5627_s17 + $0x120] ss:$16 sps:$4 sm:$0xff]  }
 0x14d   : > { %1417 = vmatprep.subr.bf16.mxu0 %v4477_v48  ;;  %1503 = vmatprep.subr.bf16.mxu1 %v4480_v49  ;;  %v4571_v48 = vld [vmem:[%s5627_s17 + $0x128] ss:$16 sps:$4 sm:$0xff]   ;;  %v4576_v49 = vld [vmem:[%s5627_s17 + $0x144] ss:$16 sps:$4 sm:$0xff]  }
 0x150   : > { %1418 = vmatpush1.bf16.msra.mxu0 %v4475_v50  ;;  %1504 = vmatpush1.bf16.msra.mxu1 %v4478_v51  ;;  %v4579_v50 = vld [vmem:[%s5627_s17 + $0x14c] ss:$16 sps:$4 sm:$0xff]   ;;  %v4574_v51 = vld [vmem:[%s5627_s17 + $0x140] ss:$16 sps:$4 sm:$0xff]  }
 0x151   : > { %1419 = vmatprep.subr.bf16.mxu0 %v4483_v10  ;;  %1505 = vmatprep.subr.bf16.mxu1 %v4486_v52  ;;  %v4577_v10 = vld [vmem:[%s5627_s17 + $0x148] ss:$16 sps:$4 sm:$0xff]   ;;  %v4582_v52 = vld [vmem:[%s5627_s17 + $0x164] ss:$16 sps:$4 sm:$0xff]  }
 0x154   : > { %1420 = vmatpush1.bf16.msra.mxu0 %v4481_v53  ;;  %1506 = vmatpush1.bf16.msra.mxu1 %v4484_v54  ;;  %v4585_v53 = vld [vmem:[%s5627_s17 + $0x16c] ss:$16 sps:$4 sm:$0xff]   ;;  %v4580_v54 = vld [vmem:[%s5627_s17 + $0x160] ss:$16 sps:$4 sm:$0xff]  }
 0x155   : > { %1421 = vmatprep.subr.bf16.mxu0 %v4489_v55  ;;  %1507 = vmatprep.subr.bf16.mxu1 %v4492_v56  ;;  %v4583_v55 = vld [vmem:[%s5627_s17 + $0x168] ss:$16 sps:$4 sm:$0xff]   ;;  %v4588_v56 = vld [vmem:[%s5627_s17 + $0x184] ss:$16 sps:$4 sm:$0xff]  }
 0x158   : > { %1422 = vmatpush1.bf16.msra.mxu0 %v4487_v57  ;;  %1508 = vmatpush1.bf16.msra.mxu1 %v4490_v58  ;;  %v4591_v57 = vld [vmem:[%s5627_s17 + $0x18c] ss:$16 sps:$4 sm:$0xff]   ;;  %v4586_v58 = vld [vmem:[%s5627_s17 + $0x180] ss:$16 sps:$4 sm:$0xff]  }
 0x159   : > { %1423 = vmatprep.subr.bf16.mxu0 %v4495_v59  ;;  %1509 = vmatprep.subr.bf16.mxu1 %v4498_v60  ;;  %v4589_v59 = vld [vmem:[%s5627_s17 + $0x188] ss:$16 sps:$4 sm:$0xff]   ;;  %v4594_v60 = vld [vmem:[%s5627_s17 + $0x1a4] ss:$16 sps:$4 sm:$0xff]  }
 0x15c   : > { %1424 = vmatpush1.bf16.msra.mxu0 %v4493_v61  ;;  %1510 = vmatpush1.bf16.msra.mxu1 %v4496_v62  ;;  %v4597_v61 = vld [vmem:[%s5627_s17 + $0x1ac] ss:$16 sps:$4 sm:$0xff]   ;;  %v4592_v62 = vld [vmem:[%s5627_s17 + $0x1a0] ss:$16 sps:$4 sm:$0xff]  }
 0x15d   : > { %1425 = vmatprep.subr.bf16.mxu0 %v4501_v63  ;;  %1511 = vmatprep.subr.bf16.mxu1 %v4504_v0  ;;  %v4595_v63 = vld [vmem:[%s5627_s17 + $0x1a8] ss:$16 sps:$4 sm:$0xff]   ;;  %v478_v0 = vlaneseq }
 0x160   : > { %1426 = vmatpush1.bf16.msra.mxu0 %v4499_v1  ;;  %1512 = vmatpush1.bf16.msra.mxu1 %v4502_v2  ;;  %v5843_v1 = vshrl.u32 %v478_v0, 7 }
 0x161   : > { %1427 = vmatprep.subr.bf16.mxu0 %v4507_v3  ;;  %1513 = vmatprep.subr.bf16.mxu1 %v4510_v4  ;;  %v5848_v4 = vld [vmem:[%s5612_s18 + $0x10] sm:$0xff] }
 0x162   : > { %v480_v2 = vsub.s32 1, %v5843_v1  ;;  %v536_v3 = vsub.s32 2, %v5843_v1 }
 0x164   : > { %1428 = vmatpush1.bf16.msra.mxu0 %v4505_v5  ;;  %1514 = vmatpush1.bf16.msra.mxu1 %v4508_v6  ;;  %v504_v5 = vsub.s32 0, %v5843_v1  ;;  %v489_v6 = vrot.slane %v5848_v4, %v480_v2 }
 0x165   : > { %2354 = vmatprep.subr.bf16.mxu0 %v4516_v8  ;;  %2440 = vmatprep.subr.bf16.mxu1 %v4519_v9  ;;  %v4600_v9 = vld [vmem:[%s5627_s17 + $0x1c4] ss:$16 sps:$4 sm:$0xff]  }
 0x166   : > { %v513_v8 = vrot.slane %v5848_v4, %v504_v5 }
 0x167   : > { %1430 = vmatmul.mubr.bf16.vlgmr.msra.gmra.mrb[0].mxu0 %v4511_v7  ;;  %1516 = vmatmul.mubr.bf16.vlgmr.msra.gmra.mrb[0].mxu1 %v4511_v7  ;;  %v545_v7 = vrot.slane %v5848_v4, %v536_v3 }
 0x168   : > { %2355 = vmatpush1.bf16.msra.mxu0 %v4514_v11  ;;  %2441 = vmatpush1.bf16.msra.mxu1 %v4517_v12  ;;  %v4603_v11 = vld [vmem:[%s5627_s17 + $0x1cc] ss:$16 sps:$4 sm:$0xff]  }
 0x169   : > { %2356 = vmatprep.subr.bf16.mxu0 %v4522_v13  ;;  %2442 = vmatprep.subr.bf16.mxu1 %v4525_v14  ;;  %v4598_v14 = vld [vmem:[%s5627_s17 + $0x1c0] ss:$16 sps:$4 sm:$0xff]  }
 0x16c   : > { %2357 = vmatpush1.bf16.msra.mxu0 %v4520_v15  ;;  %2443 = vmatpush1.bf16.msra.mxu1 %v4523_v16  ;;  %v4601_v15 = vld [vmem:[%s5627_s17 + $0x1c8] ss:$16 sps:$4 sm:$0xff]  }
 0x16d   : > { %2358 = vmatprep.subr.bf16.mxu0 %v4528_v17  ;;  %2444 = vmatprep.subr.bf16.mxu1 %v4531_v18 }
 0x170   : > { %2359 = vmatpush1.bf16.msra.mxu0 %v4526_v19  ;;  %2445 = vmatpush1.bf16.msra.mxu1 %v4529_v20  ;;  %v4606_v19 = vld [vmem:[%s5627_s17 + $0x1e4] ss:$16 sps:$4 sm:$0xff]   ;;  %v4609_v20 = vld [vmem:[%s5627_s17 + $0x1ec] ss:$16 sps:$4 sm:$0xff]  }
 0x171   : > { %2360 = vmatprep.subr.bf16.mxu0 %v4534_v21  ;;  %2446 = vmatprep.subr.bf16.mxu1 %v4537_v22 }
 0x174   : > { %2361 = vmatpush1.bf16.msra.mxu0 %v4532_v23  ;;  %2447 = vmatpush1.bf16.msra.mxu1 %v4535_v24  ;;  %v4604_v23 = vld [vmem:[%s5627_s17 + $0x1e0] ss:$16 sps:$4 sm:$0xff]   ;;  %v4607_v24 = vld [vmem:[%s5627_s17 + $0x1e8] ss:$16 sps:$4 sm:$0xff]  }
 0x175   : > { %2362 = vmatprep.subr.bf16.mxu0 %v4540_v25  ;;  %2448 = vmatprep.subr.bf16.mxu1 %v4543_v26 }
 0x178   : > { %2363 = vmatpush1.bf16.msra.mxu0 %v4538_v27  ;;  %2449 = vmatpush1.bf16.msra.mxu1 %v4541_v28  ;;  %v4612_v28 = vld [vmem:[%s5627_s17 + $0x204] ss:$16 sps:$4 sm:$0xff]  }
 0x179   : > { %2364 = vmatprep.subr.bf16.mxu0 %v4546_v29  ;;  %2450 = vmatprep.subr.bf16.mxu1 %v4549_v30  ;;  %v4615_v29 = vld [vmem:[%s5627_s17 + $0x20c] ss:$16 sps:$4 sm:$0xff]  }
 0x17c   : > { %2365 = vmatpush1.bf16.msra.mxu0 %v4544_v31  ;;  %2451 = vmatpush1.bf16.msra.mxu1 %v4547_v32  ;;  %v5867_v32 = vld [vmem:[%s5612_s18] sm:$0xff] }
 0x17d   : > { %2366 = vmatprep.subr.bf16.mxu0 %v4552_v33  ;;  %2452 = vmatprep.subr.bf16.mxu1 %v4555_v34  ;;  %v5870_v33 = vld [vmem:[%s5612_s18 + $0x8] sm:$0xff]  ;;  %v5873_v34 = vld [vmem:[%s5612_s18 + $0x18] sm:$0xff] }
 0x180   : > { %2367 = vmatpush1.bf16.msra.mxu0 %v4550_v35  ;;  %2453 = vmatpush1.bf16.msra.mxu1 %v4553_v36  ;;  %v481_v35 = vrot.slane %v5867_v32, %v480_v2  ;;  %v485_v36 = vrot.slane %v5870_v33, %v480_v2 }
 0x181   : > { %2368 = vmatprep.subr.bf16.mxu0 %v4558_v37  ;;  %2454 = vmatprep.subr.bf16.mxu1 %v4561_v38  ;;  %v493_v37 = vrot.slane %v5873_v34, %v480_v2  ;;  %v537_v38 = vrot.slane %v5867_v32, %v536_v3 }
 0x184   : > { %2369 = vmatpush1.bf16.msra.mxu0 %v4556_v39  ;;  %2455 = vmatpush1.bf16.msra.mxu1 %v4559_v40  ;;  %v505_v40 = vrot.slane %v5867_v32, %v504_v5 }
 0x185   : > { %2370 = vmatprep.subr.bf16.mxu0 %v4564_v41  ;;  %2456 = vmatprep.subr.bf16.mxu1 %v4567_v42  ;;  %v541_v41 = vrot.slane %v5870_v33, %v536_v3  ;;  %v549_v42 = vrot.slane %v5873_v34, %v536_v3 }
 0x188   : > { %2371 = vmatpush1.bf16.msra.mxu0 %v4562_v43  ;;  %2457 = vmatpush1.bf16.msra.mxu1 %v4565_v44  ;;  %v509_v44 = vrot.slane %v5870_v33, %v504_v5 }
 0x189   : > { %2372 = vmatprep.subr.bf16.mxu0 %v4570_v45  ;;  %2458 = vmatprep.subr.bf16.mxu1 %v4573_v46  ;;  %v471_v12 = vpop.permute.xlu0 %470  ;;  %v528_v13 = vpop.permute.xlu1 %527  ;;  %v517_v46 = vrot.slane %v5873_v34, %v504_v5 }
 0x18a   : > { %v496_v16 = vmul.f32 %v489_v6, %v471_v12  ;;  %v552_v17 = vmul.f32 %v545_v7, %v528_v13  ;;  %v494_v39 = vmul.f32 %v481_v35, %v471_v12  ;;  %v495_v43 = vmul.f32 %v485_v36, %v471_v12 }
 0x18b   : > { %v497_v45 = vmul.f32 %v493_v37, %v471_v12 }
 0x18c   : > { %2373 = vmatpush1.bf16.msra.mxu0 %v4568_v47  ;;  %2459 = vmatpush1.bf16.msra.mxu1 %v4571_v48  ;;  %v520_v18 = vadd.f32 %v513_v8, %v496_v16  ;;  %v518_v47 = vadd.f32 %v505_v40, %v494_v39  ;;  %v550_v48 = vmul.f32 %v537_v38, %v528_v13 }
 0x18d   : > { %2374 = vmatprep.subr.bf16.mxu0 %v4576_v49  ;;  %2460 = vmatprep.subr.bf16.mxu1 %v4579_v50  ;;  %v476_v21 = vpop.permute.xlu0 %475  ;;  %v532_v22 = vpop.permute.xlu1 %531  ;;  %v1536_v50 = vsub.s32 5, %v5843_v1 }
 0x18e   : > { %v500_v25 = vmul.f32 %v489_v6, %v476_v21  ;;  %v556_v26 = vmul.f32 %v545_v7, %v532_v22  ;;  %v560_v27 = vadd.f32 %v552_v17, %v520_v18  ;;  %v498_v49 = vmul.f32 %v481_v35, %v476_v21 }
 0x190   : > { %2375 = vmatpush1.bf16.msra.mxu0 %v4574_v51  ;;  %2461 = vmatpush1.bf16.msra.mxu1 %v4577_v10  ;;  %v524_v30 = vadd.f32 %v513_v8, %v500_v25  ;;  %v551_v51 = vmul.f32 %v541_v41, %v528_v13  ;;  %v553_v10 = vmul.f32 %v549_v42, %v528_v13 }
 0x191   : > { %2376 = vmatprep.subr.bf16.mxu0 %v4582_v52  ;;  %2462 = vmatprep.subr.bf16.mxu1 %v4585_v53  ;;  %v499_v52 = vmul.f32 %v485_v36, %v476_v21  ;;  %v501_v53 = vmul.f32 %v493_v37, %v476_v21  ;;  %v1549_v13 = vrot.slane %v5873_v34, %v1536_v50 }
 0x192   : > { %v5864_v31 = vadd.f32 %v556_v26, %v524_v30 }
 0x193   : > { %v523_v6 = vadd.f32 %v509_v44, %v499_v52  ;;  %v525_v7 = vadd.f32 %v517_v46, %v501_v53  ;;  %v4621_v52 = vld [vmem:[%s5627_s17 + $0x22c] ss:$16 sps:$4 sm:$0xff]   ;;  %v4616_v53 = vld [vmem:[%s5627_s17 + $0x220] ss:$16 sps:$4 sm:$0xff]  }
 0x194   : > { %2377 = vmatpush1.bf16.msra.mxu0 %v4580_v54  ;;  %2463 = vmatpush1.bf16.msra.mxu1 %v4583_v55  ;;  %v519_v54 = vadd.f32 %v509_v44, %v495_v43  ;;  %v521_v55 = vadd.f32 %v517_v46, %v497_v45 }
 0x195   : > { %2378 = vmatprep.subr.bf16.mxu0 %v4588_v56  ;;  %2464 = vmatprep.subr.bf16.mxu1 %v4591_v57  ;;  %v558_v56 = vadd.f32 %v550_v48, %v518_v47  ;;  %v554_v57 = vmul.f32 %v537_v38, %v532_v22 }
 0x196   : > { %v559_v3 = vadd.f32 %v551_v51, %v519_v54  ;;  %v561_v5 = vadd.f32 %v553_v10, %v521_v55  ;;  %v4618_v10 = vld [vmem:[%s5627_s17 + $0x224] ss:$16 sps:$4 sm:$0xff]   ;;  %v4619_v54 = vld [vmem:[%s5627_s17 + $0x228] ss:$16 sps:$4 sm:$0xff]  }
 0x197   : > { %v4624_v55 = vld [vmem:[%s5627_s17 + $0x244] ss:$16 sps:$4 sm:$0xff]  }
 0x198   : > { %2379 = vmatpush1.bf16.msra.mxu0 %v4586_v58  ;;  %2465 = vmatpush1.bf16.msra.mxu1 %v4589_v59  ;;  %v1537_v58 = vrot.slane %v5867_v32, %v1536_v50  ;;  %v522_v59 = vadd.f32 %v505_v40, %v498_v49  ;;  %v4610_v49 = vld [vmem:[%s5627_s17 + $0x200] ss:$16 sps:$4 sm:$0xff]  }
 0x199   : > { %2380 = vmatprep.subr.bf16.mxu0 %v4594_v60  ;;  %2466 = vmatprep.subr.bf16.mxu1 %v4597_v61  ;;  %v555_v60 = vmul.f32 %v541_v41, %v532_v22  ;;  %v557_v61 = vmul.f32 %v549_v42, %v532_v22 }
 0x19a   : > { %v562_v16 = vadd.f32 %v554_v57, %v522_v59  ;;  %v4622_v57 = vld [vmem:[%s5627_s17 + $0x240] ss:$16 sps:$4 sm:$0xff]   ;;  %v4630_v59 = vld [vmem:[%s5627_s17 + $0x264] ss:$16 sps:$4 sm:$0xff]  }
 0x19b   : > { %v565_v25 = vadd.f32 %v557_v61, %v525_v7  ;;  %v4628_v61 = vld [vmem:[%s5627_s17 + $0x260] ss:$16 sps:$4 sm:$0xff]  }
 0x19c   : > { %2381 = vmatpush1.bf16.msra.mxu0 %v4592_v62  ;;  %2467 = vmatpush1.bf16.msra.mxu1 %v4595_v63  ;;  %v1545_v62 = vrot.slane %v5848_v4, %v1536_v50  ;;  %v1541_v63 = vrot.slane %v5870_v33, %v1536_v50  ;;  %v4613_v50 = vld [vmem:[%s5627_s17 + $0x208] ss:$16 sps:$4 sm:$0xff]   ;;  %v4640_v7 = vld [vmem:[%s5627_s17 + $0x2a0] ss:$16 sps:$4 sm:$0xff]  }
 0x19d   : > { %2382 = vmatprep.subr.bf16.mxu0 %v4600_v9  ;;  %2468 = vmatprep.subr.bf16.mxu1 %v4603_v11 }
 0x1a0   : > { %2383 = vmatpush1.bf16.msra.mxu0 %v4598_v14  ;;  %2469 = vmatpush1.bf16.msra.mxu1 %v4601_v15 }
 0x1a1   : > { %2384 = vmatprep.subr.bf16.mxu0 %v4606_v19  ;;  %2470 = vmatprep.subr.bf16.mxu1 %v4609_v20 }
 0x1a4   : > { %2385 = vmatpush1.bf16.msra.mxu0 %v4604_v23  ;;  %2471 = vmatpush1.bf16.msra.mxu1 %v4607_v24  ;;  %v563_v24 = vadd.f32 %v555_v60, %v523_v6  ;;  %v4633_v60 = vld [vmem:[%s5627_s17 + $0x26c] ss:$16 sps:$4 sm:$0xff]  }
 0x1a5   : > { %2397 = vmatprep.subr.bf16.mxu0 %v4612_v28  ;;  %2483 = vmatprep.subr.bf16.mxu1 %v4615_v29  ;;  %v4645_v6 = vld [vmem:[%s5627_s17 + $0x2ac] ss:$16 sps:$4 sm:$0xff]  }
 0x23a   : > { %v1431_v0 = vpop.f32.mrb[0].mxu0  ;;  %v1517_v2 = vpop.f32.mrb[0].mxu1 }
 0x23b   : > { %v4118_v8 = vadd.f32 %v1431_v0, %v558_v56  ;;  %v4122_v9 = vadd.f32 %v1517_v2, %v560_v27  ;;  %v1433_v11 = vpop.f32.mrb[1].mxu0  ;;  %v1519_v12 = vpop.f32.mrb[1].mxu1  ;;  %v4627_v56 = vld [vmem:[%s5627_s17 + $0x24c] ss:$16 sps:$4 sm:$0xff]   ;;  %v4634_v2 = vld [vmem:[%s5627_s17 + $0x280] ss:$16 sps:$4 sm:$0xff]  }
 0x23c   : > { %v4119_v14 = vadd.f32 %v1433_v11, %v559_v3  ;;  %v4123_v15 = vadd.f32 %v1519_v12, %v561_v5  ;;  %v1435_v17 = vpop.f32.mrb[2].mxu0  ;;  %v1521_v18 = vpop.f32.mrb[2].mxu1  ;;  %v4639_v0 = vld [vmem:[%s5627_s17 + $0x28c] ss:$16 sps:$4 sm:$0xff]   ;;  %v4637_v3 = vld [vmem:[%s5627_s17 + $0x288] ss:$16 sps:$4 sm:$0xff]  }
 0x23d   : > { %vm1526_vm0 = vcmp.gt.f32.partialorder %v4118_v8, 0.0  ;;  %v1550_v19 = vmul.f32 %v4118_v8, %v1537_v58  ;;  %vm1528_vm1 = vcmp.gt.f32.partialorder %v4122_v9, 0.0  ;;  %v1552_v20 = vmul.f32 %v4122_v9, %v1545_v62  ;;  %v1437_v21 = vpop.f32.mrb[3].mxu0  ;;  %v1523_v22 = vpop.f32.mrb[3].mxu1  ;;  %v4642_v5 = vld [vmem:[%s5627_s17 + $0x2a4] ss:$16 sps:$4 sm:$0xff]  }
 0x23e   : > { %vm1527_vm2 = vcmp.gt.f32.partialorder %v4119_v14, 0.0  ;;  %v1551_v23 = vmul.f32 %v4119_v14, %v1541_v63  ;;  %v1553_v27 = vmul.f32 %v4123_v15, %v1549_v13  ;;  %v4120_v28 = vadd.f32 %v1435_v17, %v562_v16  ;;  %v4651_v11 = vld [vmem:[%s5627_s17 + $0x2cc] ss:$16 sps:$4 sm:$0xff]   ;;  %v4646_v12 = vld [vmem:[%s5627_s17 + $0x2c0] ss:$16 sps:$4 sm:$0xff]  }
 0x23f   : > { %v1560_v26 = vsel %vm1528_vm1, %v4122_v9, %v1552_v20  ;;  %v4124_v29 = vadd.f32 %v1521_v18, %v5864_v31  ;;  %v1558_v30 = vsel %vm1526_vm0, %v4118_v8, %v1550_v19  ;;  %vm1529_vm3 = vcmp.gt.f32.partialorder %v4123_v15, 0.0  ;;  %v4643_v8 = vld [vmem:[%s5627_s17 + $0x2a8] ss:$16 sps:$4 sm:$0xff]   ;;  %v4648_v9 = vld [vmem:[%s5627_s17 + $0x2c4] ss:$16 sps:$4 sm:$0xff]  }
 0x240   : > { %v4121_v35 = vadd.f32 %v1437_v21, %v563_v24  ;;  %v4125_v36 = vadd.f32 %v1523_v22, %v565_v25  ;;  %vm1530_vm4 = vcmp.gt.f32.partialorder %v4120_v28, 0.0  ;;  %v1554_v37 = vmul.f32 %v4120_v28, %v1537_v58  ;;  %v4625_v58 = vld [vmem:[%s5627_s17 + $0x248] ss:$16 sps:$4 sm:$0xff]   ;;  %v4652_v16 = vld [vmem:[%s5627_s17 + $0x2e0] ss:$16 sps:$4 sm:$0xff]  }
 0x241   : > { %vm1532_vm5 = vcmp.gt.f32.partialorder %v4124_v29, 0.0  ;;  %v1556_v38 = vmul.f32 %v4124_v29, %v1545_v62  ;;  %v1559_v31 = vsel %vm1527_vm2, %v4119_v14, %v1551_v23  ;;  %v1561_v43 = vsel %vm1529_vm3, %v4123_v15, %v1553_v27  ;;  %v4631_v62 = vld [vmem:[%s5627_s17 + $0x268] ss:$16 sps:$4 sm:$0xff]   ;;  %v4654_v14 = vld [vmem:[%s5627_s17 + $0x2e4] ss:$16 sps:$4 sm:$0xff]  }
 0x242   : > { %vm1531_vm6 = vcmp.gt.f32.partialorder %v4121_v35, 0.0  ;;  %v1555_v39 = vmul.f32 %v4121_v35, %v1541_v63  ;;  %vm1533_vm7 = vcmp.gt.f32.partialorder %v4125_v36, 0.0  ;;  %v1557_v40 = vmul.f32 %v4125_v36, %v1549_v13  ;;  %v4636_v63 = vld [vmem:[%s5627_s17 + $0x284] ss:$16 sps:$4 sm:$0xff]   ;;  %v4649_v13 = vld [vmem:[%s5627_s17 + $0x2c8] ss:$16 sps:$4 sm:$0xff]  }
 0x243   : > { %v1562_v41 = vsel %vm1530_vm4, %v4120_v28, %v1554_v37  ;;  %v1564_v42 = vsel %vm1532_vm5, %v4124_v29, %v1556_v38  ;;  %v4657_v15 = vld [vmem:[%s5627_s17 + $0x2ec] ss:$16 sps:$4 sm:$0xff]   ;;  %v4655_v17 = vld [vmem:[%s5627_s17 + $0x2e8] ss:$16 sps:$4 sm:$0xff]   ;;  %v4660_v18 = vld [vmem:[%s5627_s17 + $0x304] ss:$16 sps:$4 sm:$0xff]  }
 0x244   : > { %v1566_v44 = vpack.c.bf16 %v1562_v41, %v1558_v30  ;;  %v5891_v45 = vpack.c.bf16 %v1564_v42, %v1560_v26  ;;  %v1563_v46 = vsel %vm1531_vm6, %v4121_v35, %v1555_v39  ;;  %v1565_v47 = vsel %vm1533_vm7, %v4125_v36, %v1557_v40  ;;  %v4663_v19 = vld [vmem:[%s5627_s17 + $0x30c] ss:$16 sps:$4 sm:$0xff]   ;;  %v4658_v20 = vld [vmem:[%s5627_s17 + $0x300] ss:$16 sps:$4 sm:$0xff]   ;;  %v4661_v21 = vld [vmem:[%s5627_s17 + $0x308] ss:$16 sps:$4 sm:$0xff]  }
 0x245   : > { %v1567_v48 = vpack.c.bf16 %v1563_v46, %v1559_v31  ;;  %v1569_v51 = vpack.c.bf16 %v1565_v47, %v1561_v43  ;;  %v4666_v22 = vld [vmem:[%s5627_s17 + $0x324] ss:$16 sps:$4 sm:$0xff]   ;;  %v4669_v23 = vld [vmem:[%s5627_s17 + $0x32c] ss:$16 sps:$4 sm:$0xff]   ;;  %v4664_v24 = vld [vmem:[%s5627_s17 + $0x320] ss:$16 sps:$4 sm:$0xff]  }
 0x246   : > { %v4667_v25 = vld [vmem:[%s5627_s17 + $0x328] ss:$16 sps:$4 sm:$0xff]   ;;  %v4672_v26 = vld [vmem:[%s5627_s17 + $0x344] ss:$16 sps:$4 sm:$0xff]   ;;  %v4675_v27 = vld [vmem:[%s5627_s17 + $0x34c] ss:$16 sps:$4 sm:$0xff]  }
 0x247   : > { %2386 = vmatprep.mubr.bf16.mxu0 %v1567_v48  ;;  %2472 = vmatprep.mubr.bf16.mxu1 %v1567_v48  ;;  %v4670_v28 = vld [vmem:[%s5627_s17 + $0x340] ss:$16 sps:$4 sm:$0xff]   ;;  %v4673_v29 = vld [vmem:[%s5627_s17 + $0x348] ss:$16 sps:$4 sm:$0xff]   ;;  %v4678_v30 = vld [vmem:[%s5627_s17 + $0x364] ss:$16 sps:$4 sm:$0xff]  }
 0x248   : > { %2387 = vmatmul.mubr.bf16.vlgmr.msra.gmra.mrb[4].mxu0 %v1566_v44  ;;  %2473 = vmatmul.mubr.bf16.vlgmr.msra.gmra.mrb[4].mxu1 %v1566_v44  ;;  %v4681_v35 = vld [vmem:[%s5627_s17 + $0x36c] ss:$16 sps:$4 sm:$0xff]   ;;  %v4676_v36 = vld [vmem:[%s5627_s17 + $0x360] ss:$16 sps:$4 sm:$0xff]   ;;  %v4679_v37 = vld [vmem:[%s5627_s17 + $0x368] ss:$16 sps:$4 sm:$0xff]  }
 0x249   : > { %2398 = vmatpush1.bf16.msra.mxu0 %v4610_v49  ;;  %2484 = vmatpush1.bf16.msra.mxu1 %v4613_v50  ;;  %v4684_v38 = vld [vmem:[%s5627_s17 + $0x384] ss:$16 sps:$4 sm:$0xff]   ;;  %v4687_v39 = vld [vmem:[%s5627_s17 + $0x38c] ss:$16 sps:$4 sm:$0xff]   ;;  %v4682_v40 = vld [vmem:[%s5627_s17 + $0x380] ss:$16 sps:$4 sm:$0xff]  }
 0x24a   : > { %2429 = vmatprep.mubr.bf16.mxu0 %v1569_v51  ;;  %2515 = vmatprep.mubr.bf16.mxu1 %v1569_v51  ;;  %v4685_v41 = vld [vmem:[%s5627_s17 + $0x388] ss:$16 sps:$4 sm:$0xff]   ;;  %v4690_v42 = vld [vmem:[%s5627_s17 + $0x3a4] ss:$16 sps:$4 sm:$0xff]   ;;  %v4693_v31 = vld [vmem:[%s5627_s17 + $0x3ac] ss:$16 sps:$4 sm:$0xff]  }
 0x24b   : > { %2399 = vmatprep.subr.bf16.mxu0 %v4618_v10  ;;  %2485 = vmatprep.subr.bf16.mxu1 %v4621_v52  ;;  %v4688_v43 = vld [vmem:[%s5627_s17 + $0x3a0] ss:$16 sps:$4 sm:$0xff]   ;;  %v4691_v44 = vld [vmem:[%s5627_s17 + $0x3a8] ss:$16 sps:$4 sm:$0xff]   ;;  %v4696_v46 = vld [vmem:[%s5627_s17 + $0x3c4] ss:$16 sps:$4 sm:$0xff]  }
 0x24c   : > { %v4699_v47 = vld [vmem:[%s5627_s17 + $0x3cc] ss:$16 sps:$4 sm:$0xff]   ;;  %v4694_v48 = vld [vmem:[%s5627_s17 + $0x3c0] ss:$16 sps:$4 sm:$0xff]   ;;  %v4697_v49 = vld [vmem:[%s5627_s17 + $0x3c8] ss:$16 sps:$4 sm:$0xff]  }
 0x24d   : > { %2400 = vmatpush1.bf16.msra.mxu0 %v4616_v53  ;;  %2486 = vmatpush1.bf16.msra.mxu1 %v4619_v54  ;;  %v4702_v50 = vld [vmem:[%s5627_s17 + $0x3e4] ss:$16 sps:$4 sm:$0xff]   ;;  %v4705_v51 = vld [vmem:[%s5627_s17 + $0x3ec] ss:$16 sps:$4 sm:$0xff]   ;;  %v4700_v10 = vld [vmem:[%s5627_s17 + $0x3e0] ss:$16 sps:$4 sm:$0xff]  }
 0x24e   : > { %2401 = vmatprep.subr.bf16.mxu0 %v4624_v55  ;;  %2487 = vmatprep.subr.bf16.mxu1 %v4627_v56  ;;  %v4703_v52 = vld [vmem:[%s5627_s17 + $0x3e8] ss:$16 sps:$4 sm:$0xff]   ;;  %v4708_v53 = vld [vmem:[%s5634_s30 + $0x4] ss:$16 sps:$4 sm:$0xff]   ;;  %v4711_v54 = vld [vmem:[%s5634_s30 + $0xc] ss:$16 sps:$4 sm:$0xff]  }
 0x24f   : > { %v4706_v55 = vld [vmem:[%s5634_s30] ss:$16 sps:$4 sm:$0xff]   ;;  %v4709_v56 = vld [vmem:[%s5634_s30 + $0x8] ss:$16 sps:$4 sm:$0xff]  }
 0x251   : > { %2402 = vmatpush1.bf16.msra.mxu0 %v4622_v57  ;;  %2488 = vmatpush1.bf16.msra.mxu1 %v4625_v58  ;;  %v4714_v57 = vld [vmem:[%s5634_s30 + $0x24] ss:$16 sps:$4 sm:$0xff]   ;;  %v4717_v58 = vld [vmem:[%s5634_s30 + $0x2c] ss:$16 sps:$4 sm:$0xff]  }
 0x252   : > { %2403 = vmatprep.subr.bf16.mxu0 %v4630_v59  ;;  %2489 = vmatprep.subr.bf16.mxu1 %v4633_v60  ;;  %v4712_v59 = vld [vmem:[%s5634_s30 + $0x20] ss:$16 sps:$4 sm:$0xff]   ;;  %v4715_v60 = vld [vmem:[%s5634_s30 + $0x28] ss:$16 sps:$4 sm:$0xff]  }
 0x255   : > { %2404 = vmatpush1.bf16.msra.mxu0 %v4628_v61  ;;  %2490 = vmatpush1.bf16.msra.mxu1 %v4631_v62  ;;  %v4720_v61 = vld [vmem:[%s5634_s30 + $0x44] ss:$16 sps:$4 sm:$0xff]   ;;  %v4723_v62 = vld [vmem:[%s5634_s30 + $0x4c] ss:$16 sps:$4 sm:$0xff]  }
 0x256   : > { %2405 = vmatprep.subr.bf16.mxu0 %v4636_v63  ;;  %2491 = vmatprep.subr.bf16.mxu1 %v4639_v0  ;;  %v4718_v63 = vld [vmem:[%s5634_s30 + $0x40] ss:$16 sps:$4 sm:$0xff]   ;;  %v4721_v0 = vld [vmem:[%s5634_s30 + $0x48] ss:$16 sps:$4 sm:$0xff]  }
 0x259   : > { %2406 = vmatpush1.bf16.msra.mxu0 %v4634_v2  ;;  %2492 = vmatpush1.bf16.msra.mxu1 %v4637_v3  ;;  %v4729_v2 = vld [vmem:[%s5634_s30 + $0x6c] ss:$16 sps:$4 sm:$0xff]   ;;  %v4724_v3 = vld [vmem:[%s5634_s30 + $0x60] ss:$16 sps:$4 sm:$0xff]  }
 0x25a   : > { %2407 = vmatprep.subr.bf16.mxu0 %v4642_v5  ;;  %2493 = vmatprep.subr.bf16.mxu1 %v4645_v6  ;;  %v4727_v5 = vld [vmem:[%s5634_s30 + $0x68] ss:$16 sps:$4 sm:$0xff]   ;;  %v4732_v6 = vld [vmem:[%s5634_s30 + $0x84] ss:$16 sps:$4 sm:$0xff]  }
 0x25d   : > { %2408 = vmatpush1.bf16.msra.mxu0 %v4640_v7  ;;  %2494 = vmatpush1.bf16.msra.mxu1 %v4643_v8  ;;  %v4735_v7 = vld [vmem:[%s5634_s30 + $0x8c] ss:$16 sps:$4 sm:$0xff]   ;;  %v4730_v8 = vld [vmem:[%s5634_s30 + $0x80] ss:$16 sps:$4 sm:$0xff]  }
 0x25e   : > { %2409 = vmatprep.subr.bf16.mxu0 %v4648_v9  ;;  %2495 = vmatprep.subr.bf16.mxu1 %v4651_v11  ;;  %v4733_v9 = vld [vmem:[%s5634_s30 + $0x88] ss:$16 sps:$4 sm:$0xff]   ;;  %v4738_v11 = vld [vmem:[%s5634_s30 + $0xa4] ss:$16 sps:$4 sm:$0xff]  }
 0x261   : > { %2410 = vmatpush1.bf16.msra.mxu0 %v4646_v12  ;;  %2496 = vmatpush1.bf16.msra.mxu1 %v4649_v13  ;;  %v4741_v12 = vld [vmem:[%s5634_s30 + $0xac] ss:$16 sps:$4 sm:$0xff]   ;;  %v4736_v13 = vld [vmem:[%s5634_s30 + $0xa0] ss:$16 sps:$4 sm:$0xff]  }
 0x262   : > { %2411 = vmatprep.subr.bf16.mxu0 %v4654_v14  ;;  %2497 = vmatprep.subr.bf16.mxu1 %v4657_v15  ;;  %v4739_v14 = vld [vmem:[%s5634_s30 + $0xa8] ss:$16 sps:$4 sm:$0xff]   ;;  %v4744_v15 = vld [vmem:[%s5634_s30 + $0xc4] ss:$16 sps:$4 sm:$0xff]  }
 0x265   : > { %2412 = vmatpush1.bf16.msra.mxu0 %v4652_v16  ;;  %2498 = vmatpush1.bf16.msra.mxu1 %v4655_v17  ;;  %v4747_v16 = vld [vmem:[%s5634_s30 + $0xcc] ss:$16 sps:$4 sm:$0xff]   ;;  %v4742_v17 = vld [vmem:[%s5634_s30 + $0xc0] ss:$16 sps:$4 sm:$0xff]  }
 0x266   : > { %2413 = vmatprep.subr.bf16.mxu0 %v4660_v18  ;;  %2499 = vmatprep.subr.bf16.mxu1 %v4663_v19  ;;  %v4745_v18 = vld [vmem:[%s5634_s30 + $0xc8] ss:$16 sps:$4 sm:$0xff]   ;;  %v4750_v19 = vld [vmem:[%s5634_s30 + $0xe4] ss:$16 sps:$4 sm:$0xff]  }
 0x269   : > { %2414 = vmatpush1.bf16.msra.mxu0 %v4658_v20  ;;  %2500 = vmatpush1.bf16.msra.mxu1 %v4661_v21  ;;  %v4753_v20 = vld [vmem:[%s5634_s30 + $0xec] ss:$16 sps:$4 sm:$0xff]   ;;  %v4748_v21 = vld [vmem:[%s5634_s30 + $0xe0] ss:$16 sps:$4 sm:$0xff]  }
 0x26a   : > { %2415 = vmatprep.subr.bf16.mxu0 %v4666_v22  ;;  %2501 = vmatprep.subr.bf16.mxu1 %v4669_v23  ;;  %v4751_v22 = vld [vmem:[%s5634_s30 + $0xe8] ss:$16 sps:$4 sm:$0xff]   ;;  %v4756_v23 = vld [vmem:[%s5634_s30 + $0x104] ss:$16 sps:$4 sm:$0xff]  }
 0x26d   : > { %2416 = vmatpush1.bf16.msra.mxu0 %v4664_v24  ;;  %2502 = vmatpush1.bf16.msra.mxu1 %v4667_v25  ;;  %v4759_v24 = vld [vmem:[%s5634_s30 + $0x10c] ss:$16 sps:$4 sm:$0xff]   ;;  %v4754_v25 = vld [vmem:[%s5634_s30 + $0x100] ss:$16 sps:$4 sm:$0xff]  }
 0x26e   : > { %2417 = vmatprep.subr.bf16.mxu0 %v4672_v26  ;;  %2503 = vmatprep.subr.bf16.mxu1 %v4675_v27  ;;  %v4757_v26 = vld [vmem:[%s5634_s30 + $0x108] ss:$16 sps:$4 sm:$0xff]   ;;  %v4762_v27 = vld [vmem:[%s5634_s30 + $0x124] ss:$16 sps:$4 sm:$0xff]  }
 0x271   : > { %2418 = vmatpush1.bf16.msra.mxu0 %v4670_v28  ;;  %2504 = vmatpush1.bf16.msra.mxu1 %v4673_v29  ;;  %v4765_v28 = vld [vmem:[%s5634_s30 + $0x12c] ss:$16 sps:$4 sm:$0xff]   ;;  %v4760_v29 = vld [vmem:[%s5634_s30 + $0x120] ss:$16 sps:$4 sm:$0xff]  }
 0x272   : > { %2419 = vmatprep.subr.bf16.mxu0 %v4678_v30  ;;  %2505 = vmatprep.subr.bf16.mxu1 %v4681_v35  ;;  %v4763_v30 = vld [vmem:[%s5634_s30 + $0x128] ss:$16 sps:$4 sm:$0xff]   ;;  %v4768_v35 = vld [vmem:[%s5634_s30 + $0x144] ss:$16 sps:$4 sm:$0xff]  }
 0x275   : > { %2420 = vmatpush1.bf16.msra.mxu0 %v4676_v36  ;;  %2506 = vmatpush1.bf16.msra.mxu1 %v4679_v37  ;;  %v4771_v36 = vld [vmem:[%s5634_s30 + $0x14c] ss:$16 sps:$4 sm:$0xff]   ;;  %v4766_v37 = vld [vmem:[%s5634_s30 + $0x140] ss:$16 sps:$4 sm:$0xff]  }
 0x276   : > { %2421 = vmatprep.subr.bf16.mxu0 %v4684_v38  ;;  %2507 = vmatprep.subr.bf16.mxu1 %v4687_v39  ;;  %v4769_v38 = vld [vmem:[%s5634_s30 + $0x148] ss:$16 sps:$4 sm:$0xff]   ;;  %v4774_v39 = vld [vmem:[%s5634_s30 + $0x164] ss:$16 sps:$4 sm:$0xff]  }
 0x279   : > { %2422 = vmatpush1.bf16.msra.mxu0 %v4682_v40  ;;  %2508 = vmatpush1.bf16.msra.mxu1 %v4685_v41  ;;  %v4777_v40 = vld [vmem:[%s5634_s30 + $0x16c] ss:$16 sps:$4 sm:$0xff]   ;;  %v4772_v41 = vld [vmem:[%s5634_s30 + $0x160] ss:$16 sps:$4 sm:$0xff]  }
 0x27a   : > { %2423 = vmatprep.subr.bf16.mxu0 %v4690_v42  ;;  %2509 = vmatprep.subr.bf16.mxu1 %v4693_v31  ;;  %v4775_v42 = vld [vmem:[%s5634_s30 + $0x168] ss:$16 sps:$4 sm:$0xff]   ;;  %v4780_v31 = vld [vmem:[%s5634_s30 + $0x184] ss:$16 sps:$4 sm:$0xff]  }
 0x27d   : > { %2424 = vmatpush1.bf16.msra.mxu0 %v4688_v43  ;;  %2510 = vmatpush1.bf16.msra.mxu1 %v4691_v44  ;;  %v4783_v43 = vld [vmem:[%s5634_s30 + $0x18c] ss:$16 sps:$4 sm:$0xff]   ;;  %v4778_v44 = vld [vmem:[%s5634_s30 + $0x180] ss:$16 sps:$4 sm:$0xff]  }
 0x27e   : > { %2425 = vmatprep.subr.bf16.mxu0 %v4696_v46  ;;  %2511 = vmatprep.subr.bf16.mxu1 %v4699_v47  ;;  %v4781_v46 = vld [vmem:[%s5634_s30 + $0x188] ss:$16 sps:$4 sm:$0xff]   ;;  %v4786_v47 = vld [vmem:[%s5634_s30 + $0x1a4] ss:$16 sps:$4 sm:$0xff]  }
 0x281   : > { %2426 = vmatpush1.bf16.msra.mxu0 %v4694_v48  ;;  %2512 = vmatpush1.bf16.msra.mxu1 %v4697_v49  ;;  %v4789_v48 = vld [vmem:[%s5634_s30 + $0x1ac] ss:$16 sps:$4 sm:$0xff]   ;;  %v4784_v49 = vld [vmem:[%s5634_s30 + $0x1a0] ss:$16 sps:$4 sm:$0xff]  }
 0x282   : > { %2427 = vmatprep.subr.bf16.mxu0 %v4702_v50  ;;  %2513 = vmatprep.subr.bf16.mxu1 %v4705_v51  ;;  %v4787_v50 = vld [vmem:[%s5634_s30 + $0x1a8] ss:$16 sps:$4 sm:$0xff]   ;;  %v4792_v51 = vld [vmem:[%s5634_s30 + $0x1c4] ss:$16 sps:$4 sm:$0xff]  }
 0x285   : > { %2428 = vmatpush1.bf16.msra.mxu0 %v4700_v10  ;;  %2514 = vmatpush1.bf16.msra.mxu1 %v4703_v52  ;;  %v4795_v10 = vld [vmem:[%s5634_s30 + $0x1cc] ss:$16 sps:$4 sm:$0xff]   ;;  %v4790_v52 = vld [vmem:[%s5634_s30 + $0x1c0] ss:$16 sps:$4 sm:$0xff]  }
 0x286   : > { %3354 = vmatprep.subr.bf16.mxu0 %v4708_v53  ;;  %3440 = vmatprep.subr.bf16.mxu1 %v4711_v54  ;;  %v4793_v53 = vld [vmem:[%s5634_s30 + $0x1c8] ss:$16 sps:$4 sm:$0xff]   ;;  %v4798_v54 = vld [vmem:[%s5634_s30 + $0x1e4] ss:$16 sps:$4 sm:$0xff]  }
 0x288   : > { %2430 = vmatmul.mubr.bf16.vlgmr.msra.gmra.mrb[4].mxu0 %v5891_v45  ;;  %2516 = vmatmul.mubr.bf16.vlgmr.msra.gmra.mrb[4].mxu1 %v5891_v45  ;;  %v4726_v45 = vld [vmem:[%s5634_s30 + $0x64] ss:$16 sps:$4 sm:$0xff]  }
 0x289   : > { %3355 = vmatpush1.bf16.msra.mxu0 %v4706_v55  ;;  %3441 = vmatpush1.bf16.msra.mxu1 %v4709_v56  ;;  %v4801_v55 = vld [vmem:[%s5634_s30 + $0x1ec] ss:$16 sps:$4 sm:$0xff]   ;;  %v4796_v56 = vld [vmem:[%s5634_s30 + $0x1e0] ss:$16 sps:$4 sm:$0xff]  }
 0x28a   : > { %3356 = vmatprep.subr.bf16.mxu0 %v4714_v57  ;;  %3442 = vmatprep.subr.bf16.mxu1 %v4717_v58  ;;  %v4799_v57 = vld [vmem:[%s5634_s30 + $0x1e8] ss:$16 sps:$4 sm:$0xff]   ;;  %v4804_v58 = vld [vmem:[%s5634_s30 + $0x204] ss:$16 sps:$4 sm:$0xff]  }
 0x28d   : > { %3357 = vmatpush1.bf16.msra.mxu0 %v4712_v59  ;;  %3443 = vmatpush1.bf16.msra.mxu1 %v4715_v60  ;;  %v4807_v59 = vld [vmem:[%s5634_s30 + $0x20c] ss:$16 sps:$4 sm:$0xff]   ;;  %v1700_v60 = vsub.s32 3, %v5843_v1 }
 0x28e   : > { %3358 = vmatprep.subr.bf16.mxu0 %v4720_v61  ;;  %3444 = vmatprep.subr.bf16.mxu1 %v4723_v62  ;;  %v2536_v61 = vsub.s32 6, %v5843_v1 }
 0x28f   : > { %v1701_v62 = vrot.slane %v5867_v32, %v1700_v60 }
 0x291   : > { %3359 = vmatpush1.bf16.msra.mxu0 %v4718_v63  ;;  %3445 = vmatpush1.bf16.msra.mxu1 %v4721_v0  ;;  %v1709_v63 = vrot.slane %v5848_v4, %v1700_v60  ;;  %v1705_v0 = vrot.slane %v5870_v33, %v1700_v60 }
 0x292   : > { %3360 = vmatprep.subr.bf16.mxu0 %v4726_v45  ;;  %3446 = vmatprep.subr.bf16.mxu1 %v4729_v2  ;;  %v1713_v45 = vrot.slane %v5873_v34, %v1700_v60  ;;  %v2537_v2 = vrot.slane %v5867_v32, %v2536_v61  ;;  %v4829_v60 = vld [vmem:[%s5634_s30 + $0x288] ss:$16 sps:$4 sm:$0xff]  }
 0x295   : > { %3361 = vmatpush1.bf16.msra.mxu0 %v4724_v3  ;;  %3447 = vmatpush1.bf16.msra.mxu1 %v4727_v5  ;;  %v2545_v3 = vrot.slane %v5848_v4, %v2536_v61 }
 0x296   : > { %3362 = vmatprep.subr.bf16.mxu0 %v4732_v6  ;;  %3448 = vmatprep.subr.bf16.mxu1 %v4735_v7  ;;  %v2541_v7 = vrot.slane %v5870_v33, %v2536_v61 }
 0x299   : > { %3363 = vmatpush1.bf16.msra.mxu0 %v4730_v8  ;;  %3449 = vmatpush1.bf16.msra.mxu1 %v4733_v9 }
 0x29a   : > { %3364 = vmatprep.subr.bf16.mxu0 %v4738_v11  ;;  %3450 = vmatprep.subr.bf16.mxu1 %v4741_v12 }
 0x29d   : > { %3365 = vmatpush1.bf16.msra.mxu0 %v4736_v13  ;;  %3451 = vmatpush1.bf16.msra.mxu1 %v4739_v14  ;;  %v2549_v13 = vrot.slane %v5873_v34, %v2536_v61  ;;  %v4834_v61 = vld [vmem:[%s5634_s30 + $0x2a4] ss:$16 sps:$4 sm:$0xff]  }
 0x29e   : > { %3366 = vmatprep.subr.bf16.mxu0 %v4744_v15  ;;  %3452 = vmatprep.subr.bf16.mxu1 %v4747_v16 }
 0x2a1   : > { %3367 = vmatpush1.bf16.msra.mxu0 %v4742_v17  ;;  %3453 = vmatpush1.bf16.msra.mxu1 %v4745_v18 }
 0x2a2   : > { %3368 = vmatprep.subr.bf16.mxu0 %v4750_v19  ;;  %3454 = vmatprep.subr.bf16.mxu1 %v4753_v20 }
 0x2a5   : > { %3369 = vmatpush1.bf16.msra.mxu0 %v4748_v21  ;;  %3455 = vmatpush1.bf16.msra.mxu1 %v4751_v22 }
 0x2a6   : > { %3370 = vmatprep.subr.bf16.mxu0 %v4756_v23  ;;  %3456 = vmatprep.subr.bf16.mxu1 %v4759_v24 }
 0x2a9   : > { %3371 = vmatpush1.bf16.msra.mxu0 %v4754_v25  ;;  %3457 = vmatpush1.bf16.msra.mxu1 %v4757_v26 }
 0x2aa   : > { %3372 = vmatprep.subr.bf16.mxu0 %v4762_v27  ;;  %3458 = vmatprep.subr.bf16.mxu1 %v4765_v28 }
 0x2ad   : > { %3373 = vmatpush1.bf16.msra.mxu0 %v4760_v29  ;;  %3459 = vmatpush1.bf16.msra.mxu1 %v4763_v30 }
 0x2ae   : > { %3374 = vmatprep.subr.bf16.mxu0 %v4768_v35  ;;  %3460 = vmatprep.subr.bf16.mxu1 %v4771_v36 }
 0x2b1   : > { %3375 = vmatpush1.bf16.msra.mxu0 %v4766_v37  ;;  %3461 = vmatpush1.bf16.msra.mxu1 %v4769_v38 }
 0x2b2   : > { %3376 = vmatprep.subr.bf16.mxu0 %v4774_v39  ;;  %3462 = vmatprep.subr.bf16.mxu1 %v4777_v40 }
 0x2b5   : > { %3377 = vmatpush1.bf16.msra.mxu0 %v4772_v41  ;;  %3463 = vmatpush1.bf16.msra.mxu1 %v4775_v42 }
 0x2b6   : > { %3378 = vmatprep.subr.bf16.mxu0 %v4780_v31  ;;  %3464 = vmatprep.subr.bf16.mxu1 %v4783_v43  ;;  %v4802_v31 = vld [vmem:[%s5634_s30 + $0x200] ss:$16 sps:$4 sm:$0xff]   ;;  %v4805_v43 = vld [vmem:[%s5634_s30 + $0x208] ss:$16 sps:$4 sm:$0xff]  }
 0x2b9   : > { %3379 = vmatpush1.bf16.msra.mxu0 %v4778_v44  ;;  %3465 = vmatpush1.bf16.msra.mxu1 %v4781_v46  ;;  %v4810_v46 = vld [vmem:[%s5634_s30 + $0x224] ss:$16 sps:$4 sm:$0xff]  }
 0x2ba   : > { %3380 = vmatprep.subr.bf16.mxu0 %v4786_v47  ;;  %3466 = vmatprep.subr.bf16.mxu1 %v4789_v48  ;;  %v4813_v47 = vld [vmem:[%s5634_s30 + $0x22c] ss:$16 sps:$4 sm:$0xff]   ;;  %v4808_v48 = vld [vmem:[%s5634_s30 + $0x220] ss:$16 sps:$4 sm:$0xff]  }
 0x2bd   : > { %3381 = vmatpush1.bf16.msra.mxu0 %v4784_v49  ;;  %3467 = vmatpush1.bf16.msra.mxu1 %v4787_v50  ;;  %v4811_v49 = vld [vmem:[%s5634_s30 + $0x228] ss:$16 sps:$4 sm:$0xff]   ;;  %v4816_v50 = vld [vmem:[%s5634_s30 + $0x244] ss:$16 sps:$4 sm:$0xff]  }
 0x2be   : > { %3382 = vmatprep.subr.bf16.mxu0 %v4792_v51  ;;  %3468 = vmatprep.subr.bf16.mxu1 %v4795_v10  ;;  %v4819_v51 = vld [vmem:[%s5634_s30 + $0x24c] ss:$16 sps:$4 sm:$0xff]   ;;  %v4814_v10 = vld [vmem:[%s5634_s30 + $0x240] ss:$16 sps:$4 sm:$0xff]  }
 0x2c1   : > { %3383 = vmatpush1.bf16.msra.mxu0 %v4790_v52  ;;  %3469 = vmatpush1.bf16.msra.mxu1 %v4793_v53  ;;  %v4817_v52 = vld [vmem:[%s5634_s30 + $0x248] ss:$16 sps:$4 sm:$0xff]   ;;  %v4822_v53 = vld [vmem:[%s5634_s30 + $0x264] ss:$16 sps:$4 sm:$0xff]  }
 0x2c2   : > { %3384 = vmatprep.subr.bf16.mxu0 %v4798_v54  ;;  %3470 = vmatprep.subr.bf16.mxu1 %v4801_v55  ;;  %v4825_v54 = vld [vmem:[%s5634_s30 + $0x26c] ss:$16 sps:$4 sm:$0xff]   ;;  %v4820_v55 = vld [vmem:[%s5634_s30 + $0x260] ss:$16 sps:$4 sm:$0xff]  }
 0x2c5   : > { %3385 = vmatpush1.bf16.msra.mxu0 %v4796_v56  ;;  %3471 = vmatpush1.bf16.msra.mxu1 %v4799_v57  ;;  %v4823_v56 = vld [vmem:[%s5634_s30 + $0x268] ss:$16 sps:$4 sm:$0xff]   ;;  %v4828_v57 = vld [vmem:[%s5634_s30 + $0x284] ss:$16 sps:$4 sm:$0xff]  }
 0x2c6   : > { %3397 = vmatprep.subr.bf16.mxu0 %v4804_v58  ;;  %3483 = vmatprep.subr.bf16.mxu1 %v4807_v59  ;;  %v4831_v58 = vld [vmem:[%s5634_s30 + $0x28c] ss:$16 sps:$4 sm:$0xff]   ;;  %v4826_v59 = vld [vmem:[%s5634_s30 + $0x280] ss:$16 sps:$4 sm:$0xff]  }
 0x35b   : > { %v2431_v5 = vpop.f32.mrb[4].mxu0  ;;  %v2517_v6 = vpop.f32.mrb[4].mxu1 }
 0x35c   : > { %v4126_v8 = vadd.f32 %v2431_v5, %v1701_v62  ;;  %v4130_v9 = vadd.f32 %v2517_v6, %v1709_v63  ;;  %v2433_v11 = vpop.f32.mrb[5].mxu0  ;;  %v2519_v12 = vpop.f32.mrb[5].mxu1  ;;  %v4841_v5 = vld [vmem:[%s5634_s30 + $0x2c8] ss:$16 sps:$4 sm:$0xff]   ;;  %v4846_v6 = vld [vmem:[%s5634_s30 + $0x2e4] ss:$16 sps:$4 sm:$0xff]  }
 0x35d   : > { %v4127_v14 = vadd.f32 %v2433_v11, %v1705_v0  ;;  %v4131_v15 = vadd.f32 %v2519_v12, %v1713_v45  ;;  %v2435_v16 = vpop.f32.mrb[6].mxu0  ;;  %v2521_v17 = vpop.f32.mrb[6].mxu1  ;;  %v4852_v11 = vld [vmem:[%s5634_s30 + $0x304] ss:$16 sps:$4 sm:$0xff]   ;;  %v4855_v12 = vld [vmem:[%s5634_s30 + $0x30c] ss:$16 sps:$4 sm:$0xff]  }
 0x35e   : > { %vm2526_vm8 = vcmp.gt.f32.partialorder %v4126_v8, 0.0  ;;  %v2550_v18 = vmul.f32 %v4126_v8, %v2537_v2  ;;  %vm2528_vm9 = vcmp.gt.f32.partialorder %v4130_v9, 0.0  ;;  %v2552_v32 = vmul.f32 %v4130_v9, %v2545_v3  ;;  %v2437_v19 = vpop.f32.mrb[7].mxu0  ;;  %v2523_v4 = vpop.f32.mrb[7].mxu1 }
 0x35f   : > { %vm2527_vm10 = vcmp.gt.f32.partialorder %v4127_v14, 0.0  ;;  %v2551_v20 = vmul.f32 %v4127_v14, %v2541_v7  ;;  %v2553_v33 = vmul.f32 %v4131_v15, %v2549_v13  ;;  %v4128_v22 = vadd.f32 %v2435_v16, %v1701_v62  ;;  %v4837_v62 = vld [vmem:[%s5634_s30 + $0x2ac] ss:$16 sps:$4 sm:$0xff]  }
 0x360   : > { %v2560_v21 = vsel %vm2528_vm9, %v4130_v9, %v2552_v32  ;;  %v4132_v23 = vadd.f32 %v2521_v17, %v1709_v63  ;;  %v2558_v24 = vsel %vm2526_vm8, %v4126_v8, %v2550_v18  ;;  %vm2529_vm11 = vcmp.gt.f32.partialorder %v4131_v15, 0.0  ;;  %v4832_v63 = vld [vmem:[%s5634_s30 + $0x2a0] ss:$16 sps:$4 sm:$0xff]   ;;  %v4847_v9 = vld [vmem:[%s5634_s30 + $0x2e8] ss:$16 sps:$4 sm:$0xff]  }
 0x361   : > { %v4129_v25 = vadd.f32 %v2437_v19, %v1705_v0  ;;  %v4133_v34 = vadd.f32 %v2523_v4, %v1713_v45  ;;  %vm2530_vm12 = vcmp.gt.f32.partialorder %v4128_v22, 0.0  ;;  %v2554_v26 = vmul.f32 %v4128_v22, %v2537_v2  ;;  %v4835_v0 = vld [vmem:[%s5634_s30 + $0x2a8] ss:$16 sps:$4 sm:$0xff]   ;;  %v4840_v45 = vld [vmem:[%s5634_s30 + $0x2c4] ss:$16 sps:$4 sm:$0xff]  }
 0x362   : > { %vm2532_vm13 = vcmp.gt.f32.partialorder %v4132_v23, 0.0  ;;  %v2556_v27 = vmul.f32 %v4132_v23, %v2545_v3  ;;  %v2559_v36 = vsel %vm2527_vm10, %v4127_v14, %v2551_v20  ;;  %v2561_v37 = vsel %vm2529_vm11, %v4131_v15, %v2553_v33  ;;  %v4843_v2 = vld [vmem:[%s5634_s30 + $0x2cc] ss:$16 sps:$4 sm:$0xff]   ;;  %v4838_v3 = vld [vmem:[%s5634_s30 + $0x2c0] ss:$16 sps:$4 sm:$0xff]  }
 0x363   : > { %vm2531_vm14 = vcmp.gt.f32.partialorder %v4129_v25, 0.0  ;;  %v2555_v28 = vmul.f32 %v4129_v25, %v2541_v7  ;;  %vm2533_vm15 = vcmp.gt.f32.partialorder %v4133_v34, 0.0  ;;  %v2557_v29 = vmul.f32 %v4133_v34, %v2549_v13  ;;  %v4849_v7 = vld [vmem:[%s5634_s30 + $0x2ec] ss:$16 sps:$4 sm:$0xff]   ;;  %v4844_v8 = vld [vmem:[%s5634_s30 + $0x2e0] ss:$16 sps:$4 sm:$0xff]  }
 0x364   : > { %v2562_v30 = vsel %vm2530_vm12, %v4128_v22, %v2554_v26  ;;  %v2564_v35 = vsel %vm2532_vm13, %v4132_v23, %v2556_v27  ;;  %v4850_v13 = vld [vmem:[%s5634_s30 + $0x300] ss:$16 sps:$4 sm:$0xff]   ;;  %v4853_v14 = vld [vmem:[%s5634_s30 + $0x308] ss:$16 sps:$4 sm:$0xff]   ;;  %v4858_v15 = vld [vmem:[%s5634_s30 + $0x324] ss:$16 sps:$4 sm:$0xff]  }
 0x365   : > { %v2566_v38 = vpack.c.bf16 %v2562_v30, %v2558_v24  ;;  %v6034_v39 = vpack.c.bf16 %v2564_v35, %v2560_v21  ;;  %v2563_v40 = vsel %vm2531_vm14, %v4129_v25, %v2555_v28  ;;  %v2565_v41 = vsel %vm2533_vm15, %v4133_v34, %v2557_v29  ;;  %v4861_v16 = vld [vmem:[%s5634_s30 + $0x32c] ss:$16 sps:$4 sm:$0xff]   ;;  %v4856_v17 = vld [vmem:[%s5634_s30 + $0x320] ss:$16 sps:$4 sm:$0xff]   ;;  %v4859_v18 = vld [vmem:[%s5634_s30 + $0x328] ss:$16 sps:$4 sm:$0xff]  }
 0x366   : > { %v2567_v42 = vpack.c.bf16 %v2563_v40, %v2559_v36  ;;  %v2569_v44 = vpack.c.bf16 %v2565_v41, %v2561_v37  ;;  %v4864_v32 = vld [vmem:[%s5634_s30 + $0x344] ss:$16 sps:$4 sm:$0xff]   ;;  %v4867_v19 = vld [vmem:[%s5634_s30 + $0x34c] ss:$16 sps:$4 sm:$0xff]   ;;  %v4862_v4 = vld [vmem:[%s5634_s30 + $0x340] ss:$16 sps:$4 sm:$0xff]  }
 0x367   : > { %v4865_v20 = vld [vmem:[%s5634_s30 + $0x348] ss:$16 sps:$4 sm:$0xff]   ;;  %v4870_v21 = vld [vmem:[%s5634_s30 + $0x364] ss:$16 sps:$4 sm:$0xff]   ;;  %v4873_v33 = vld [vmem:[%s5634_s30 + $0x36c] ss:$16 sps:$4 sm:$0xff]  }
 0x368   : > { %3386 = vmatprep.mubr.bf16.mxu0 %v2567_v42  ;;  %3472 = vmatprep.mubr.bf16.mxu1 %v2567_v42  ;;  %v4868_v22 = vld [vmem:[%s5634_s30 + $0x360] ss:$16 sps:$4 sm:$0xff]   ;;  %v4871_v23 = vld [vmem:[%s5634_s30 + $0x368] ss:$16 sps:$4 sm:$0xff]   ;;  %v4876_v24 = vld [vmem:[%s5634_s30 + $0x384] ss:$16 sps:$4 sm:$0xff]  }
 0x369   : > { %3387 = vmatmul.mubr.bf16.vlgmr.msra.gmra.mrb[8].mxu0 %v2566_v38  ;;  %3473 = vmatmul.mubr.bf16.vlgmr.msra.gmra.mrb[8].mxu1 %v2566_v38  ;;  %v4879_v25 = vld [vmem:[%s5634_s30 + $0x38c] ss:$16 sps:$4 sm:$0xff]   ;;  %v4874_v34 = vld [vmem:[%s5634_s30 + $0x380] ss:$16 sps:$4 sm:$0xff]   ;;  %v4877_v26 = vld [vmem:[%s5634_s30 + $0x388] ss:$16 sps:$4 sm:$0xff]  }
 0x36a   : > { %3398 = vmatpush1.bf16.msra.mxu0 %v4802_v31  ;;  %3484 = vmatpush1.bf16.msra.mxu1 %v4805_v43  ;;  %v4882_v27 = vld [vmem:[%s5634_s30 + $0x3a4] ss:$16 sps:$4 sm:$0xff]   ;;  %v4885_v28 = vld [vmem:[%s5634_s30 + $0x3ac] ss:$16 sps:$4 sm:$0xff]   ;;  %v4880_v29 = vld [vmem:[%s5634_s30 + $0x3a0] ss:$16 sps:$4 sm:$0xff]  }
 0x36b   : > { %3429 = vmatprep.mubr.bf16.mxu0 %v2569_v44  ;;  %3515 = vmatprep.mubr.bf16.mxu1 %v2569_v44  ;;  %v4883_v30 = vld [vmem:[%s5634_s30 + $0x3a8] ss:$16 sps:$4 sm:$0xff]   ;;  %v4888_v35 = vld [vmem:[%s5634_s30 + $0x3c4] ss:$16 sps:$4 sm:$0xff]   ;;  %v4891_v36 = vld [vmem:[%s5634_s30 + $0x3cc] ss:$16 sps:$4 sm:$0xff]  }
 0x36c   : > { %3399 = vmatprep.subr.bf16.mxu0 %v4810_v46  ;;  %3485 = vmatprep.subr.bf16.mxu1 %v4813_v47  ;;  %v4886_v37 = vld [vmem:[%s5634_s30 + $0x3c0] ss:$16 sps:$4 sm:$0xff]   ;;  %v4889_v38 = vld [vmem:[%s5634_s30 + $0x3c8] ss:$16 sps:$4 sm:$0xff]   ;;  %v4894_v40 = vld [vmem:[%s5634_s30 + $0x3e4] ss:$16 sps:$4 sm:$0xff]  }
 0x36d   : > { %v4897_v41 = vld [vmem:[%s5634_s30 + $0x3ec] ss:$16 sps:$4 sm:$0xff]   ;;  %v4892_v42 = vld [vmem:[%s5634_s30 + $0x3e0] ss:$16 sps:$4 sm:$0xff]   ;;  %v4895_v31 = vld [vmem:[%s5634_s30 + $0x3e8] ss:$16 sps:$4 sm:$0xff]  }
 0x36e   : > { %3400 = vmatpush1.bf16.msra.mxu0 %v4808_v48  ;;  %3486 = vmatpush1.bf16.msra.mxu1 %v4811_v49  ;;  %v2700_v43 = vsub.s32 4, %v5843_v1  ;;  %v4898_v44 = vld [vmem:[%s5612_s18] sm:$0xff]  ;;  %v4899_v47 = vld [vmem:[%s5612_s18 + $0x10] sm:$0xff]  ;;  %v4900_v49 = vld [vmem:[%s5612_s18 + $0x8] sm:$0xff] }
 0x36f   : > { %3401 = vmatprep.subr.bf16.mxu0 %v4816_v50  ;;  %3487 = vmatprep.subr.bf16.mxu1 %v4819_v51  ;;  %v4901_v51 = vld [vmem:[%s5612_s18 + $0x18] sm:$0xff] }
 0x370   : > { %v2701_v46 = vrot.slane %v4898_v44, %v2700_v43  ;;  %v2709_v48 = vrot.slane %v4899_v47, %v2700_v43  ;;  %v2705_v50 = vrot.slane %v4900_v49, %v2700_v43 }
 0x372   : > { %3402 = vmatpush1.bf16.msra.mxu0 %v4814_v10  ;;  %3488 = vmatpush1.bf16.msra.mxu1 %v4817_v52  ;;  %v2713_v10 = vrot.slane %v4901_v51, %v2700_v43 }
 0x373   : > { %3403 = vmatprep.subr.bf16.mxu0 %v4822_v53  ;;  %3489 = vmatprep.subr.bf16.mxu1 %v4825_v54 }
 0x376   : > { %3404 = vmatpush1.bf16.msra.mxu0 %v4820_v55  ;;  %3490 = vmatpush1.bf16.msra.mxu1 %v4823_v56 }
 0x377   : > { %3405 = vmatprep.subr.bf16.mxu0 %v4828_v57  ;;  %3491 = vmatprep.subr.bf16.mxu1 %v4831_v58 }
 0x37a   : > { %3406 = vmatpush1.bf16.msra.mxu0 %v4826_v59  ;;  %3492 = vmatpush1.bf16.msra.mxu1 %v4829_v60 }
 0x37b   : > { %3407 = vmatprep.subr.bf16.mxu0 %v4834_v61  ;;  %3493 = vmatprep.subr.bf16.mxu1 %v4837_v62 }
 0x37e   : > { %3408 = vmatpush1.bf16.msra.mxu0 %v4832_v63  ;;  %3494 = vmatpush1.bf16.msra.mxu1 %v4835_v0 }
 0x37f   : > { %3409 = vmatprep.subr.bf16.mxu0 %v4840_v45  ;;  %3495 = vmatprep.subr.bf16.mxu1 %v4843_v2 }
 0x382   : > { %3410 = vmatpush1.bf16.msra.mxu0 %v4838_v3  ;;  %3496 = vmatpush1.bf16.msra.mxu1 %v4841_v5 }
 0x383   : > { %3411 = vmatprep.subr.bf16.mxu0 %v4846_v6  ;;  %3497 = vmatprep.subr.bf16.mxu1 %v4849_v7 }
 0x386   : > { %3412 = vmatpush1.bf16.msra.mxu0 %v4844_v8  ;;  %3498 = vmatpush1.bf16.msra.mxu1 %v4847_v9 }
 0x387   : > { %3413 = vmatprep.subr.bf16.mxu0 %v4852_v11  ;;  %3499 = vmatprep.subr.bf16.mxu1 %v4855_v12 }
 0x38a   : > { %3414 = vmatpush1.bf16.msra.mxu0 %v4850_v13  ;;  %3500 = vmatpush1.bf16.msra.mxu1 %v4853_v14 }
 0x38b   : > { %3415 = vmatprep.subr.bf16.mxu0 %v4858_v15  ;;  %3501 = vmatprep.subr.bf16.mxu1 %v4861_v16 }
 0x38e   : > { %3416 = vmatpush1.bf16.msra.mxu0 %v4856_v17  ;;  %3502 = vmatpush1.bf16.msra.mxu1 %v4859_v18 }
 0x38f   : > { %3417 = vmatprep.subr.bf16.mxu0 %v4864_v32  ;;  %3503 = vmatprep.subr.bf16.mxu1 %v4867_v19 }
 0x392   : > { %3418 = vmatpush1.bf16.msra.mxu0 %v4862_v4  ;;  %3504 = vmatpush1.bf16.msra.mxu1 %v4865_v20 }
 0x393   : > { %3419 = vmatprep.subr.bf16.mxu0 %v4870_v21  ;;  %3505 = vmatprep.subr.bf16.mxu1 %v4873_v33 }
 0x396   : > { %3420 = vmatpush1.bf16.msra.mxu0 %v4868_v22  ;;  %3506 = vmatpush1.bf16.msra.mxu1 %v4871_v23 }
 0x397   : > { %3421 = vmatprep.subr.bf16.mxu0 %v4876_v24  ;;  %3507 = vmatprep.subr.bf16.mxu1 %v4879_v25 }
 0x39a   : > { %3422 = vmatpush1.bf16.msra.mxu0 %v4874_v34  ;;  %3508 = vmatpush1.bf16.msra.mxu1 %v4877_v26 }
 0x39b   : > { %3423 = vmatprep.subr.bf16.mxu0 %v4882_v27  ;;  %3509 = vmatprep.subr.bf16.mxu1 %v4885_v28 }
 0x39e   : > { %3424 = vmatpush1.bf16.msra.mxu0 %v4880_v29  ;;  %3510 = vmatpush1.bf16.msra.mxu1 %v4883_v30 }
 0x39f   : > { %3425 = vmatprep.subr.bf16.mxu0 %v4888_v35  ;;  %3511 = vmatprep.subr.bf16.mxu1 %v4891_v36 }
 0x3a2   : > { %3426 = vmatpush1.bf16.msra.mxu0 %v4886_v37  ;;  %3512 = vmatpush1.bf16.msra.mxu1 %v4889_v38 }
 0x3a3   : > { %3427 = vmatprep.subr.bf16.mxu0 %v4894_v40  ;;  %3513 = vmatprep.subr.bf16.mxu1 %v4897_v41 }
 0x3a6   : > { %3428 = vmatpush1.bf16.msra.mxu0 %v4892_v42  ;;  %3514 = vmatpush1.bf16.msra.mxu1 %v4895_v31 }
 0x3a9   : > { %3430 = vmatmul.mubr.bf16.vlgmr.msra.gmra.mrb[8].mxu0 %v6034_v39  ;;  %3516 = vmatmul.mubr.bf16.vlgmr.msra.gmra.mrb[8].mxu1 %v6034_v39 }
 0x47c   : > { %v3431_v52 = vpop.f32.mrb[8].mxu0  ;;  %v3517_v53 = vpop.f32.mrb[8].mxu1 }
 0x47d   : > { %v4134_v54 = vadd.f32 %v3431_v52, %v2701_v46  ;;  %v4138_v55 = vadd.f32 %v3517_v53, %v2709_v48  ;;  %v3433_v39 = vpop.f32.mrb[9].mxu0  ;;  %v3519_v56 = vpop.f32.mrb[9].mxu1 }
 0x47e   : > { %v4135_v1 = vadd.f32 %v3433_v39, %v2705_v50  ;;  %v4139_v57 = vadd.f32 %v3519_v56, %v2713_v10  ;;  %v3435_v58 = vpop.f32.mrb[10].mxu0  ;;  %v3521_v59 = vpop.f32.mrb[10].mxu1 }
 0x47f   : > { %3526 = vst [vmem:[%s456_s4] sm:$0xff] %v4134_v54  ;;  %3528 = vst [vmem:[%s456_s4 + $0x10] sm:$0xff] %v4138_v55  ;;  %v4136_v60 = vadd.f32 %v3435_v58, %v2701_v46  ;;  %v4140_v61 = vadd.f32 %v3521_v59, %v2709_v48  ;;  %v3437_v62 = vpop.f32.mrb[11].mxu0  ;;  %v3523_v63 = vpop.f32.mrb[11].mxu1 }
 0x480   : > { %3527 = vst [vmem:[%s456_s4 + $0x8] sm:$0xff] %v4135_v1  ;;  %3529 = vst [vmem:[%s456_s4 + $0x18] sm:$0xff] %v4139_v57  ;;  %v4137_v0 = vadd.f32 %v3437_v62, %v2705_v50  ;;  %v4141_v45 = vadd.f32 %v3523_v63, %v2713_v10 }
 0x481   : > { %3530 = vst [vmem:[%s456_s4 + $0x20] sm:$0xff] %v4136_v60  ;;  %3532 = vst [vmem:[%s456_s4 + $0x30] sm:$0xff] %v4140_v61 }
 0x482   : > { %3531 = vst [vmem:[%s456_s4 + $0x28] sm:$0xff] %v4137_v0  ;;  %3533 = vst [vmem:[%s456_s4 + $0x38] sm:$0xff] %v4141_v45 }
 0x483 PF: > { %s6229_s18 = smov %s5564_s11  ;;  %s6230_s16 = sld [smem:[#allocation24_spill]] }
 0x484   : > { %s6231_s17 = sld [smem:[#allocation25_spill]]  ;;  %s6232_s2 = sld [smem:[#allocation28_spill]] }
 0x485   : > { %s6233_s30 = sld [smem:[#allocation26_spill]]  ;;  %s6234_s21 = sld [smem:[#allocation29_spill]] }
 0x486   : > { %p27_p9 = scmp.ge.s32.totalorder %s5282_s24, 6   ;;  %s6235_s11 = smov %s5108_s12 }
 0x487   : > { %s6236_s12 = smov %s5112_s13  ;;  %s6237_s13 = smov %s6229_s18 }
 0x488   : > { %s6238_s14 = smov %s5120_s15  ;;  %s6239_s15 = smov %s5124_s0 }
 0x489   : > { %s6240_s0 = smov %s5476_s1  ;;  %s6242_s19 = smov %s5144_s20 }
 0x48a   : > { %s6241_s18 = smov %s6232_s2  ;;  %s6244_s22 = smov %s5282_s24 }
 0x48b   : > { %s6243_s20 = smov %s6233_s30  ;;  %29 = sbr.rel (!%p27_p9) target bundleno = 25 (0x19), region = 127 }
 0x492   :  { %3558 = vsyncpa [#allocation5], 1 }
 0x493   :  { %3560 = vsyncpa [#allocation5 + $0x1], 1 }
 0x494   :  { %3561 = vsyncpa [#allocation7], 1 }
 0x495   :  { %3563 = vsyncpa [#allocation7 + $0x1], 1 }
 0x496   :  { %3564 = vsyncpa [#allocation10], 1 }
 0x497   :  { %3566 = vsyncpa [#allocation10 + $0x1], 1 }

</bundles_post_ra>
